<compile_context>
chip_gen: v7x
topology: tpu7x:2x2x1
jax: 0.10.0
libtpu: 0.0.40
codegen_flags: <defaults>
</compile_context>

<pallas_src>
import jax
import jax.numpy as jnp
from jax.experimental import pallas as pl
from jax.experimental.pallas import tpu as pltpu


# ----------------------------------------------------------------------------
# Fused kernel factory (conv stack + FC + heads), fully unrolled from a static
# plan of Python ints.  Refs: inputs..., output, then VMEM scratches:
#   in_0..in_n   : (padded) NHWC-flat activation of each stage (in_n = FC input)
#   pat_0..pat_{n-1}: im2col patch matrices, rows ordered (oh, ow, batch)
#   y_0..y_{n-1} : conv outputs (post-ReLU) before scatter into the next stage
# ----------------------------------------------------------------------------
def _make_fused_kernel(plan):
    convs = plan["convs"]
    n_conv = len(convs)
    tb = plan["tb"]
    n_act = plan["actions"]

    def kernel(*refs):
        img_ref = refs[0]
        w_refs = [refs[1 + 2 * i] for i in range(n_conv)]
        b_refs = [refs[2 + 2 * i] for i in range(n_conv)]
        base = 1 + 2 * n_conv
        wfc_ref, bfc_ref, wh_ref, bh_ref = refs[base:base + 4]
        out_ref = refs[base + 4]
        s0 = base + 5
        in_refs = list(refs[s0:s0 + n_conv + 1])
        pat_refs = list(refs[s0 + n_conv + 1:s0 + 2 * n_conv + 1])
        y_refs = list(refs[s0 + 2 * n_conv + 1:s0 + 3 * n_conv + 1])

        # Stage-0 input: single uint8 -> f32 cast into VMEM (1/255 is already
        # folded into the conv1 weights, so no scale here).
        cv0 = convs[0]
        if cv0["pad"] == 0:
            in_refs[0][...] = img_ref[...].astype(jnp.float32)
        else:
            in_refs[0][...] = jnp.zeros_like(in_refs[0])
            img_f = img_ref[...].astype(jnp.float32)
            w_in, c_in, p, wp = cv0["w_in"], cv0["c_in"], cv0["pad"], cv0["wp"]
            for h in range(cv0["h_in"]):
                dst = ((h + p) * wp + p) * c_in
                in_refs[0][:, dst:dst + w_in * c_in] = (
                    img_f[:, h * w_in * c_in:(h + 1) * w_in * c_in])

        # Conv stack: in-VMEM im2col -> one MXU matmul per layer -> ReLU ->
        # scatter into next stage's (padded) NHWC-flat activation scratch.
        for i, cv in enumerate(convs):
            k, s = cv["k"], cv["s"]
            cin, cout = cv["c_in"], cv["c_out"]
            oh_n, ow_n, wp = cv["oh"], cv["ow"], cv["wp"]
            in_ref, pat_ref, y_ref = in_refs[i], pat_refs[i], y_refs[i]

            # Patch rows ordered (oh, ow, batch); columns ordered (kh, kw, c).
            for oh in range(oh_n):
                for ow in range(ow_n):
                    pos = oh * ow_n + ow
                    for kh in range(k):
                        src = ((oh * s + kh) * wp + ow * s) * cin
                        pat_ref[pos * tb:(pos + 1) * tb,
                                kh * k * cin:(kh + 1) * k * cin] = (
                            in_ref[:, src:src + k * cin])

            y = jnp.dot(pat_ref[...], w_refs[i][...],
                        preferred_element_type=jnp.float32) + b_refs[i][...]
            y_ref[...] = jnp.maximum(y, 0.0)

            nxt = in_refs[i + 1]
            p_n = cv["pad_next"]           # padding of the next conv (0 before FC)
            wp_n = ow_n + 2 * p_n
            if p_n:
                nxt[...] = jnp.zeros_like(nxt)
            for oh in range(oh_n):
                for ow in range(ow_n):
                    pos = oh * ow_n + ow
                    dst = ((oh + p_n) * wp_n + (ow + p_n)) * cout
                    nxt[:, dst:dst + cout] = y_ref[pos * tb:(pos + 1) * tb, :]

        # FC (+ReLU) and the combined pi/value head (single [fc, A+1] matmul).
        fc = jnp.dot(in_refs[n_conv][...], wfc_ref[...],
                     preferred_element_type=jnp.float32) + bfc_ref[...]
        fc = jnp.maximum(fc, 0.0)
        logits = jnp.dot(fc, wh_ref[...],
                         preferred_element_type=jnp.float32) + bh_ref[...]

        pi_logits = logits[:, :n_act]
        m = jnp.max(pi_logits, axis=-1, keepdims=True)
        e = jnp.exp(pi_logits - m)
        denom = jnp.sum(e, axis=-1, keepdims=True)
        out_ref[:, :n_act] = e * pl.reciprocal(denom, approx=True)
        out_ref[:, n_act:n_act + 1] = logits[:, n_act:n_act + 1]

    return kernel


# ----------------------------------------------------------------------------
# Parameter construction (PyTorch-convention shapes, default-init style).
# ----------------------------------------------------------------------------
def init_params(key, image_shape, output_size, fc_size=32,
                channels=(16, 32), kernel_sizes=(8, 4), strides=(4, 2),
                paddings=(0, 1)):
    C, H, W = image_shape
    keys = jax.random.split(key, 2 * len(channels) + 6)
    params = {"conv": []}
    in_c, h, w = C, H, W
    ki = 0
    for oc, k, s, p in zip(channels, kernel_sizes, strides, paddings):
        fan_in = in_c * k * k
        bound = 1.0 / jnp.sqrt(jnp.float32(fan_in))
        wk = jax.random.uniform(keys[ki], (oc, in_c, k, k), jnp.float32, -bound, bound)
        bk = jax.random.uniform(keys[ki + 1], (oc,), jnp.float32, -bound, bound)
        ki += 2
        params["conv"].append((wk, bk, k, s, p))
        h = (h + 2 * p - k) // s + 1
        w = (w + 2 * p - k) // s + 1
        in_c = oc
    conv_out = in_c * h * w

    def lin(kw_, kb_, fin, fout):
        bound = 1.0 / jnp.sqrt(jnp.float32(fin))
        W_ = jax.random.uniform(kw_, (fin, fout), jnp.float32, -bound, bound)
        b_ = jax.random.uniform(kb_, (1, fout), jnp.float32, -bound, bound)
        return W_, b_

    params["fc_w"], params["fc_b"] = lin(keys[ki], keys[ki + 1], conv_out, fc_size)
    params["pi_w"], params["pi_b"] = lin(keys[ki + 2], keys[ki + 3], fc_size, output_size)
    params["v_w"], params["v_b"] = lin(keys[ki + 4], keys[ki + 5], fc_size, 1)
    return params


# ----------------------------------------------------------------------------
# One-time, weights-only preprocessing into the fused-kernel layout.
# ----------------------------------------------------------------------------
def prepare_params(params, image_shape, output_size):
    c_img, h, w = image_shape
    convs, weights = [], []
    h_in, w_in, c_in = h, w, c_img
    pads = [cfg[4] for cfg in params["conv"]] + [0]
    for li, (wk, bk, k, s, p) in enumerate(params["conv"]):
        c_out = wk.shape[0]
        hp, wp = h_in + 2 * p, w_in + 2 * p
        oh, ow = (hp - k) // s + 1, (wp - k) // s + 1
        convs.append(dict(k=k, s=s, pad=p, c_in=c_in, c_out=c_out,
                          h_in=h_in, w_in=w_in, hp=hp, wp=wp,
                          oh=oh, ow=ow, pad_next=pads[li + 1]))
        # [Cout, Cin, kh, kw] -> [(kh, kw, cin), Cout]; fold 1/255 into layer 0.
        w2d = wk.transpose(2, 3, 1, 0).reshape(k * k * c_in, c_out)
        if li == 0:
            w2d = w2d * (1.0 / 255.0)
        weights.append((w2d, bk.reshape(1, c_out)))
        h_in, w_in, c_in = oh, ow, c_out

    # FC weight rows: NCHW-flat (PyTorch flatten order) -> NHWC-flat (kernel order).
    perm = (jnp.arange(c_in * h_in * w_in).reshape(c_in, h_in, w_in)
            .transpose(1, 2, 0).reshape(-1))
    wfc = params["fc_w"][perm, :]
    # Combined pi/value head (one matmul, lane-dense [TB, A+1] output).
    wh = jnp.concatenate([params["pi_w"], params["v_w"]], axis=1)
    bh = jnp.concatenate([params["pi_b"], params["v_b"]], axis=1)
    return {"convs": convs, "conv_weights": weights,
            "fc_w": wfc, "fc_b": params["fc_b"], "head_w": wh, "head_b": bh,
            "image_shape": tuple(image_shape), "actions": int(output_size)}


# ----------------------------------------------------------------------------
# Forward pass (matches AtariFfModel.forward semantics).
# ----------------------------------------------------------------------------
def atari_ff_forward(prepared, image):
    img_ndim = 3
    lead_dim = image.ndim - img_ndim
    assert lead_dim in (0, 1, 2)
    if lead_dim == 2:
        T, B = image.shape[0], image.shape[1]
    elif lead_dim == 1:
        T, B = 1, image.shape[0]
    else:
        T, B = 1, 1
    tb = T * B

    c_img, h, w = prepared["image_shape"]
    n_act = prepared["actions"]
    convs = prepared["convs"]
    n_conv = len(convs)

    # Keep the image uint8 end-to-end; only rearrange NCHW -> NHWC-flat (cheap,
    # 1-byte data); the f32 cast happens inside the kernel.
    x = image.reshape((tb, c_img, h, w)).transpose(0, 2, 3, 1).reshape(tb, h * w * c_img)

    kernel = _make_fused_kernel({"convs": convs, "tb": tb, "actions": n_act})

    kin = [x]
    for w2d, b2d in prepared["conv_weights"]:
        kin += [w2d, b2d]
    kin += [prepared["fc_w"], prepared["fc_b"], prepared["head_w"], prepared["head_b"]]

    scratch = []
    for cv in convs:                                    # per-stage (padded) inputs
        scratch.append(pltpu.VMEM((tb, cv["hp"] * cv["wp"] * cv["c_in"]), jnp.float32))
    last = convs[-1]                                    # FC input
    scratch.append(pltpu.VMEM((tb, last["oh"] * last["ow"] * last["c_out"]), jnp.float32))
    for cv in convs:                                    # patch matrices
        scratch.append(pltpu.VMEM((cv["oh"] * cv["ow"] * tb,
                                   cv["k"] * cv["k"] * cv["c_in"]), jnp.float32))
    for cv in convs:                                    # conv outputs
        scratch.append(pltpu.VMEM((cv["oh"] * cv["ow"] * tb, cv["c_out"]), jnp.float32))

    out = pl.pallas_call(
        kernel,
        out_shape=jax.ShapeDtypeStruct((tb, n_act + 1), jnp.float32),
        grid=(1,),
        in_specs=[pl.BlockSpec(a.shape, lambda i: (0, 0)) for a in kin],
        out_specs=pl.BlockSpec((tb, n_act + 1), lambda i: (0, 0)),
        scratch_shapes=scratch,
        compiler_params=pltpu.CompilerParams(dimension_semantics=("arbitrary",)),
    )(*kin)

    pi = out[:, :n_act]
    v = out[:, n_act]

    if lead_dim == 2:
        pi = pi.reshape(T, B, n_act)
        v = v.reshape(T, B)
    elif lead_dim == 0:
        pi = pi[0]
        v = v[0]
    return pi, v


# ----------------------------------------------------------------------------
# Pure-JAX reference (XLA conv) for a sanity check of the fused kernel.
# ----------------------------------------------------------------------------
def reference_forward(params, image):
    lead_dim = image.ndim - 3
    if lead_dim == 2:
        T, B = image.shape[0], image.shape[1]
    elif lead_dim == 1:
        T, B = 1, image.shape[0]
    else:
        T, B = 1, 1
    tb = T * B
    x = image.reshape((tb,) + image.shape[lead_dim:]).astype(jnp.float32) / 255.0
    for (wk, bk, k, s, p) in params["conv"]:
        x = jax.lax.conv_general_dilated(
            x, wk, window_strides=(s, s), padding=[(p, p), (p, p)],
            dimension_numbers=("NCHW", "OIHW", "NCHW"))
        x = jnp.maximum(x + bk.reshape(1, -1, 1, 1), 0.0)
    flat = x.reshape(tb, -1)
    fc = jnp.maximum(flat @ params["fc_w"] + params["fc_b"], 0.0)
    pi = jax.nn.softmax(fc @ params["pi_w"] + params["pi_b"], axis=-1)
    v = (fc @ params["v_w"] + params["v_b"])[:, 0]
    if lead_dim == 2:
        pi = pi.reshape(T, B, -1); v = v.reshape(T, B)
    elif lead_dim == 0:
        pi = pi[0]; v = v[0]
    return pi, v


# ----------------------------------------------------------------------------
if __name__ == "__main__":
    key = jax.random.PRNGKey(0)
    image_shape = (4, 16, 16)   # (C, H, W): conv1 -> 3x3x16, conv2 -> 1x1x32
    output_size = 6             # number of Atari actions
    batch = 2

    pkey, ikey = jax.random.split(key)
    params = init_params(pkey, image_shape, output_size, fc_size=32)
    prepared = prepare_params(params, image_shape, output_size)

    image = jax.random.randint(
        ikey, (batch,) + image_shape, 0, 256, dtype=jnp.int32).astype(jnp.uint8)
    prev_action = jnp.zeros((batch,), jnp.int32)    # unused by forward (as in rlpyt)
    prev_reward = jnp.zeros((batch,), jnp.float32)  # unused by forward

    pi, v = atari_ff_forward(prepared, image)
    jax.block_until_ready((pi, v))

    assert pi.shape == (batch, output_size), pi.shape
    assert v.shape == (batch,), v.shape
    assert bool(jnp.all(jnp.isfinite(pi))) and bool(jnp.all(jnp.isfinite(v)))
    assert bool(jnp.allclose(jnp.sum(pi, axis=-1), 1.0, atol=1e-2))

    pi_ref, v_ref = reference_forward(params, image)
    assert bool(jnp.allclose(pi, pi_ref, atol=2e-2)), (pi, pi_ref)
    assert bool(jnp.allclose(v, v_ref, atol=2e-2)), (v, v_ref)
    print("KERNEL_OK")
</pallas_src>

<mosaic_0001>
module attributes {stable_mosaic.version = 11 : i64} {
  func.func @kernel(%arg0: i32, %arg1: memref<2x1024xi8, #tpu.memory_space<vmem>>, %arg2: memref<256x16xf32, #tpu.memory_space<vmem>>, %arg3: memref<1x16xf32, #tpu.memory_space<vmem>>, %arg4: memref<256x32xf32, #tpu.memory_space<vmem>>, %arg5: memref<1x32xf32, #tpu.memory_space<vmem>>, %arg6: memref<32x32xf32, #tpu.memory_space<vmem>>, %arg7: memref<1x32xf32, #tpu.memory_space<vmem>>, %arg8: memref<32x7xf32, #tpu.memory_space<vmem>>, %arg9: memref<1x7xf32, #tpu.memory_space<vmem>>, %arg10: memref<2x7xf32, #tpu.memory_space<vmem>>, %arg11: memref<2x1024xf32, #tpu.memory_space<vmem>>, %arg12: memref<2x400xf32, #tpu.memory_space<vmem>>, %arg13: memref<2x32xf32, #tpu.memory_space<vmem>>, %arg14: memref<18x256xf32, #tpu.memory_space<vmem>>, %arg15: memref<2x256xf32, #tpu.memory_space<vmem>>, %arg16: memref<18x16xf32, #tpu.memory_space<vmem>>, %arg17: memref<2x32xf32, #tpu.memory_space<vmem>>) attributes {dimension_semantics = [#tpu.dimension_semantics<arbitrary>], iteration_bounds = array<i64: 1>, scalar_prefetch = 0 : i64, scratch_operands = 7 : i64, tpu.core_type = #tpu.core_type<tc>, window_params = [{pipeline_mode = #tpu.pipeline_mode<synchronous>, transform_indices = @transform_0, window_bounds = array<i64: 2, 1024>}, {pipeline_mode = #tpu.pipeline_mode<synchronous>, transform_indices = @transform_1, window_bounds = array<i64: 256, 16>}, {pipeline_mode = #tpu.pipeline_mode<synchronous>, transform_indices = @transform_2, window_bounds = array<i64: 1, 16>}, {pipeline_mode = #tpu.pipeline_mode<synchronous>, transform_indices = @transform_3, window_bounds = array<i64: 256, 32>}, {pipeline_mode = #tpu.pipeline_mode<synchronous>, transform_indices = @transform_4, window_bounds = array<i64: 1, 32>}, {pipeline_mode = #tpu.pipeline_mode<synchronous>, transform_indices = @transform_5, window_bounds = array<i64: 32, 32>}, {pipeline_mode = #tpu.pipeline_mode<synchronous>, transform_indices = @transform_6, window_bounds = array<i64: 1, 32>}, {pipeline_mode = #tpu.pipeline_mode<synchronous>, transform_indices = @transform_7, window_bounds = array<i64: 32, 7>}, {pipeline_mode = #tpu.pipeline_mode<synchronous>, transform_indices = @transform_8, window_bounds = array<i64: 1, 7>}, {pipeline_mode = #tpu.pipeline_mode<synchronous>, transform_indices = @transform_9, window_bounds = array<i64: 2, 7>}]} {
    %c0 = arith.constant 0 : index
    %c0_0 = arith.constant 0 : index
    %0 = vector.load %arg1[%c0, %c0_0] : memref<2x1024xi8, #tpu.memory_space<vmem>>, vector<2x1024xi8>
    %1 = arith.uitofp %0 : vector<2x1024xi8> to vector<2x1024xf32>
    %c0_1 = arith.constant 0 : index
    %c0_2 = arith.constant 0 : index
    %2 = vector.load %arg11[%c0_1, %c0_2] : memref<2x1024xf32, #tpu.memory_space<vmem>>, vector<2x1024xf32>
    tpu.vector_store %arg11[%c0_1, %c0_2], %1 {strides = array<i32>} : memref<2x1024xf32, #tpu.memory_space<vmem>>, vector<2x1024xf32>,
    %c0_3 = arith.constant 0 : index
    %c0_4 = arith.constant 0 : index
    %3 = vector.load %arg11[%c0_3, %c0_4] : memref<2x1024xf32, #tpu.memory_space<vmem>>, vector<2x32xf32>
    %c0_5 = arith.constant 0 : index
    %c0_6 = arith.constant 0 : index
    %4 = vector.load %arg14[%c0_5, %c0_6] : memref<18x256xf32, #tpu.memory_space<vmem>>, vector<2x32xf32>
    tpu.vector_store %arg14[%c0_5, %c0_6], %3 {strides = array<i32>} : memref<18x256xf32, #tpu.memory_space<vmem>>, vector<2x32xf32>,
    %c0_7 = arith.constant 0 : index
    %c64 = arith.constant 64 : index
    %5 = vector.load %arg11[%c0_7, %c64] : memref<2x1024xf32, #tpu.memory_space<vmem>>, vector<2x32xf32>
    %c0_8 = arith.constant 0 : index
    %c32 = arith.constant 32 : index
    %6 = vector.load %arg14[%c0_8, %c32] : memref<18x256xf32, #tpu.memory_space<vmem>>, vector<2x32xf32>
    tpu.vector_store %arg14[%c0_8, %c32], %5 {strides = array<i32>} : memref<18x256xf32, #tpu.memory_space<vmem>>, vector<2x32xf32>,
    %c0_9 = arith.constant 0 : index
    %c128 = arith.constant 128 : index
    %7 = vector.load %arg11[%c0_9, %c128] : memref<2x1024xf32, #tpu.memory_space<vmem>>, vector<2x32xf32>
    %c0_10 = arith.constant 0 : index
    %c64_11 = arith.constant 64 : index
    %8 = vector.load %arg14[%c0_10, %c64_11] : memref<18x256xf32, #tpu.memory_space<vmem>>, vector<2x32xf32>
    tpu.vector_store %arg14[%c0_10, %c64_11], %7 {strides = array<i32>} : memref<18x256xf32, #tpu.memory_space<vmem>>, vector<2x32xf32>,
    %c0_12 = arith.constant 0 : index
    %c192 = arith.constant 192 : index
    %9 = vector.load %arg11[%c0_12, %c192] : memref<2x1024xf32, #tpu.memory_space<vmem>>, vector<2x32xf32>
    %c0_13 = arith.constant 0 : index
    %c96 = arith.constant 96 : index
    %10 = vector.load %arg14[%c0_13, %c96] : memref<18x256xf32, #tpu.memory_space<vmem>>, vector<2x32xf32>
    tpu.vector_store %arg14[%c0_13, %c96], %9 {strides = array<i32>} : memref<18x256xf32, #tpu.memory_space<vmem>>, vector<2x32xf32>,
    %c0_14 = arith.constant 0 : index
    %c256 = arith.constant 256 : index
    %11 = vector.load %arg11[%c0_14, %c256] : memref<2x1024xf32, #tpu.memory_space<vmem>>, vector<2x32xf32>
    %c0_15 = arith.constant 0 : index
    %c128_16 = arith.constant 128 : index
    %12 = vector.load %arg14[%c0_15, %c128_16] : memref<18x256xf32, #tpu.memory_space<vmem>>, vector<2x32xf32>
    tpu.vector_store %arg14[%c0_15, %c128_16], %11 {strides = array<i32>} : memref<18x256xf32, #tpu.memory_space<vmem>>, vector<2x32xf32>,
    %c0_17 = arith.constant 0 : index
    %c320 = arith.constant 320 : index
    %13 = vector.load %arg11[%c0_17, %c320] : memref<2x1024xf32, #tpu.memory_space<vmem>>, vector<2x32xf32>
    %c0_18 = arith.constant 0 : index
    %c160 = arith.constant 160 : index
    %14 = vector.load %arg14[%c0_18, %c160] : memref<18x256xf32, #tpu.memory_space<vmem>>, vector<2x32xf32>
    tpu.vector_store %arg14[%c0_18, %c160], %13 {strides = array<i32>} : memref<18x256xf32, #tpu.memory_space<vmem>>, vector<2x32xf32>,
    %c0_19 = arith.constant 0 : index
    %c384 = arith.constant 384 : index
    %15 = vector.load %arg11[%c0_19, %c384] : memref<2x1024xf32, #tpu.memory_space<vmem>>, vector<2x32xf32>
    %c0_20 = arith.constant 0 : index
    %c192_21 = arith.constant 192 : index
    %16 = vector.load %arg14[%c0_20, %c192_21] : memref<18x256xf32, #tpu.memory_space<vmem>>, vector<2x32xf32>
    tpu.vector_store %arg14[%c0_20, %c192_21], %15 {strides = array<i32>} : memref<18x256xf32, #tpu.memory_space<vmem>>, vector<2x32xf32>,
    %c0_22 = arith.constant 0 : index
    %c448 = arith.constant 448 : index
    %17 = vector.load %arg11[%c0_22, %c448] : memref<2x1024xf32, #tpu.memory_space<vmem>>, vector<2x32xf32>
    %c0_23 = arith.constant 0 : index
    %c224 = arith.constant 224 : index
    %18 = vector.load %arg14[%c0_23, %c224] : memref<18x256xf32, #tpu.memory_space<vmem>>, vector<2x32xf32>
    tpu.vector_store %arg14[%c0_23, %c224], %17 {strides = array<i32>} : memref<18x256xf32, #tpu.memory_space<vmem>>, vector<2x32xf32>,
    %c0_24 = arith.constant 0 : index
    %c16 = arith.constant 16 : index
    %19 = vector.load %arg11[%c0_24, %c16] : memref<2x1024xf32, #tpu.memory_space<vmem>>, vector<2x32xf32>
    %c2 = arith.constant 2 : index
    %c0_25 = arith.constant 0 : index
    %20 = vector.load %arg14[%c2, %c0_25] : memref<18x256xf32, #tpu.memory_space<vmem>>, vector<2x32xf32>
    tpu.vector_store %arg14[%c2, %c0_25], %19 {strides = array<i32>} : memref<18x256xf32, #tpu.memory_space<vmem>>, vector<2x32xf32>,
    %c0_26 = arith.constant 0 : index
    %c80 = arith.constant 80 : index
    %21 = vector.load %arg11[%c0_26, %c80] : memref<2x1024xf32, #tpu.memory_space<vmem>>, vector<2x32xf32>
    %c2_27 = arith.constant 2 : index
    %c32_28 = arith.constant 32 : index
    %22 = vector.load %arg14[%c2_27, %c32_28] : memref<18x256xf32, #tpu.memory_space<vmem>>, vector<2x32xf32>
    tpu.vector_store %arg14[%c2_27, %c32_28], %21 {strides = array<i32>} : memref<18x256xf32, #tpu.memory_space<vmem>>, vector<2x32xf32>,
    %c0_29 = arith.constant 0 : index
    %c144 = arith.constant 144 : index
    %23 = vector.load %arg11[%c0_29, %c144] : memref<2x1024xf32, #tpu.memory_space<vmem>>, vector<2x32xf32>
    %c2_30 = arith.constant 2 : index
    %c64_31 = arith.constant 64 : index
    %24 = vector.load %arg14[%c2_30, %c64_31] : memref<18x256xf32, #tpu.memory_space<vmem>>, vector<2x32xf32>
    tpu.vector_store %arg14[%c2_30, %c64_31], %23 {strides = array<i32>} : memref<18x256xf32, #tpu.memory_space<vmem>>, vector<2x32xf32>,
    %c0_32 = arith.constant 0 : index
    %c208 = arith.constant 208 : index
    %25 = vector.load %arg11[%c0_32, %c208] : memref<2x1024xf32, #tpu.memory_space<vmem>>, vector<2x32xf32>
    %c2_33 = arith.constant 2 : index
    %c96_34 = arith.constant 96 : index
    %26 = vector.load %arg14[%c2_33, %c96_34] : memref<18x256xf32, #tpu.memory_space<vmem>>, vector<2x32xf32>
    tpu.vector_store %arg14[%c2_33, %c96_34], %25 {strides = array<i32>} : memref<18x256xf32, #tpu.memory_space<vmem>>, vector<2x32xf32>,
    %c0_35 = arith.constant 0 : index
    %c272 = arith.constant 272 : index
    %27 = vector.load %arg11[%c0_35, %c272] : memref<2x1024xf32, #tpu.memory_space<vmem>>, vector<2x32xf32>
    %c2_36 = arith.constant 2 : index
    %c128_37 = arith.constant 128 : index
    %28 = vector.load %arg14[%c2_36, %c128_37] : memref<18x256xf32, #tpu.memory_space<vmem>>, vector<2x32xf32>
    tpu.vector_store %arg14[%c2_36, %c128_37], %27 {strides = array<i32>} : memref<18x256xf32, #tpu.memory_space<vmem>>, vector<2x32xf32>,
    %c0_38 = arith.constant 0 : index
    %c336 = arith.constant 336 : index
    %29 = vector.load %arg11[%c0_38, %c336] : memref<2x1024xf32, #tpu.memory_space<vmem>>, vector<2x32xf32>
    %c2_39 = arith.constant 2 : index
    %c160_40 = arith.constant 160 : index
    %30 = vector.load %arg14[%c2_39, %c160_40] : memref<18x256xf32, #tpu.memory_space<vmem>>, vector<2x32xf32>
    tpu.vector_store %arg14[%c2_39, %c160_40], %29 {strides = array<i32>} : memref<18x256xf32, #tpu.memory_space<vmem>>, vector<2x32xf32>,
    %c0_41 = arith.constant 0 : index
    %c400 = arith.constant 400 : index
    %31 = vector.load %arg11[%c0_41, %c400] : memref<2x1024xf32, #tpu.memory_space<vmem>>, vector<2x32xf32>
    %c2_42 = arith.constant 2 : index
    %c192_43 = arith.constant 192 : index
    %32 = vector.load %arg14[%c2_42, %c192_43] : memref<18x256xf32, #tpu.memory_space<vmem>>, vector<2x32xf32>
    tpu.vector_store %arg14[%c2_42, %c192_43], %31 {strides = array<i32>} : memref<18x256xf32, #tpu.memory_space<vmem>>, vector<2x32xf32>,
    %c0_44 = arith.constant 0 : index
    %c464 = arith.constant 464 : index
    %33 = vector.load %arg11[%c0_44, %c464] : memref<2x1024xf32, #tpu.memory_space<vmem>>, vector<2x32xf32>
    %c2_45 = arith.constant 2 : index
    %c224_46 = arith.constant 224 : index
    %34 = vector.load %arg14[%c2_45, %c224_46] : memref<18x256xf32, #tpu.memory_space<vmem>>, vector<2x32xf32>
    tpu.vector_store %arg14[%c2_45, %c224_46], %33 {strides = array<i32>} : memref<18x256xf32, #tpu.memory_space<vmem>>, vector<2x32xf32>,
    %c0_47 = arith.constant 0 : index
    %c32_48 = arith.constant 32 : index
    %35 = vector.load %arg11[%c0_47, %c32_48] : memref<2x1024xf32, #tpu.memory_space<vmem>>, vector<2x32xf32>
    %c4 = arith.constant 4 : index
    %c0_49 = arith.constant 0 : index
    %36 = vector.load %arg14[%c4, %c0_49] : memref<18x256xf32, #tpu.memory_space<vmem>>, vector<2x32xf32>
    tpu.vector_store %arg14[%c4, %c0_49], %35 {strides = array<i32>} : memref<18x256xf32, #tpu.memory_space<vmem>>, vector<2x32xf32>,
    %c0_50 = arith.constant 0 : index
    %c96_51 = arith.constant 96 : index
    %37 = vector.load %arg11[%c0_50, %c96_51] : memref<2x1024xf32, #tpu.memory_space<vmem>>, vector<2x32xf32>
    %c4_52 = arith.constant 4 : index
    %c32_53 = arith.constant 32 : index
    %38 = vector.load %arg14[%c4_52, %c32_53] : memref<18x256xf32, #tpu.memory_space<vmem>>, vector<2x32xf32>
    tpu.vector_store %arg14[%c4_52, %c32_53], %37 {strides = array<i32>} : memref<18x256xf32, #tpu.memory_space<vmem>>, vector<2x32xf32>,
    %c0_54 = arith.constant 0 : index
    %c160_55 = arith.constant 160 : index
    %39 = vector.load %arg11[%c0_54, %c160_55] : memref<2x1024xf32, #tpu.memory_space<vmem>>, vector<2x32xf32>
    %c4_56 = arith.constant 4 : index
    %c64_57 = arith.constant 64 : index
    %40 = vector.load %arg14[%c4_56, %c64_57] : memref<18x256xf32, #tpu.memory_space<vmem>>, vector<2x32xf32>
    tpu.vector_store %arg14[%c4_56, %c64_57], %39 {strides = array<i32>} : memref<18x256xf32, #tpu.memory_space<vmem>>, vector<2x32xf32>,
    %c0_58 = arith.constant 0 : index
    %c224_59 = arith.constant 224 : index
    %41 = vector.load %arg11[%c0_58, %c224_59] : memref<2x1024xf32, #tpu.memory_space<vmem>>, vector<2x32xf32>
    %c4_60 = arith.constant 4 : index
    %c96_61 = arith.constant 96 : index
    %42 = vector.load %arg14[%c4_60, %c96_61] : memref<18x256xf32, #tpu.memory_space<vmem>>, vector<2x32xf32>
    tpu.vector_store %arg14[%c4_60, %c96_61], %41 {strides = array<i32>} : memref<18x256xf32, #tpu.memory_space<vmem>>, vector<2x32xf32>,
    %c0_62 = arith.constant 0 : index
    %c288 = arith.constant 288 : index
    %43 = vector.load %arg11[%c0_62, %c288] : memref<2x1024xf32, #tpu.memory_space<vmem>>, vector<2x32xf32>
    %c4_63 = arith.constant 4 : index
    %c128_64 = arith.constant 128 : index
    %44 = vector.load %arg14[%c4_63, %c128_64] : memref<18x256xf32, #tpu.memory_space<vmem>>, vector<2x32xf32>
    tpu.vector_store %arg14[%c4_63, %c128_64], %43 {strides = array<i32>} : memref<18x256xf32, #tpu.memory_space<vmem>>, vector<2x32xf32>,
    %c0_65 = arith.constant 0 : index
    %c352 = arith.constant 352 : index
    %45 = vector.load %arg11[%c0_65, %c352] : memref<2x1024xf32, #tpu.memory_space<vmem>>, vector<2x32xf32>
    %c4_66 = arith.constant 4 : index
    %c160_67 = arith.constant 160 : index
    %46 = vector.load %arg14[%c4_66, %c160_67] : memref<18x256xf32, #tpu.memory_space<vmem>>, vector<2x32xf32>
    tpu.vector_store %arg14[%c4_66, %c160_67], %45 {strides = array<i32>} : memref<18x256xf32, #tpu.memory_space<vmem>>, vector<2x32xf32>,
    %c0_68 = arith.constant 0 : index
    %c416 = arith.constant 416 : index
    %47 = vector.load %arg11[%c0_68, %c416] : memref<2x1024xf32, #tpu.memory_space<vmem>>, vector<2x32xf32>
    %c4_69 = arith.constant 4 : index
    %c192_70 = arith.constant 192 : index
    %48 = vector.load %arg14[%c4_69, %c192_70] : memref<18x256xf32, #tpu.memory_space<vmem>>, vector<2x32xf32>
    tpu.vector_store %arg14[%c4_69, %c192_70], %47 {strides = array<i32>} : memref<18x256xf32, #tpu.memory_space<vmem>>, vector<2x32xf32>,
    %c0_71 = arith.constant 0 : index
    %c480 = arith.constant 480 : index
    %49 = vector.load %arg11[%c0_71, %c480] : memref<2x1024xf32, #tpu.memory_space<vmem>>, vector<2x32xf32>
    %c4_72 = arith.constant 4 : index
    %c224_73 = arith.constant 224 : index
    %50 = vector.load %arg14[%c4_72, %c224_73] : memref<18x256xf32, #tpu.memory_space<vmem>>, vector<2x32xf32>
    tpu.vector_store %arg14[%c4_72, %c224_73], %49 {strides = array<i32>} : memref<18x256xf32, #tpu.memory_space<vmem>>, vector<2x32xf32>,
    %c0_74 = arith.constant 0 : index
    %c256_75 = arith.constant 256 : index
    %51 = vector.load %arg11[%c0_74, %c256_75] : memref<2x1024xf32, #tpu.memory_space<vmem>>, vector<2x32xf32>
    %c6 = arith.constant 6 : index
    %c0_76 = arith.constant 0 : index
    %52 = vector.load %arg14[%c6, %c0_76] : memref<18x256xf32, #tpu.memory_space<vmem>>, vector<2x32xf32>
    tpu.vector_store %arg14[%c6, %c0_76], %51 {strides = array<i32>} : memref<18x256xf32, #tpu.memory_space<vmem>>, vector<2x32xf32>,
    %c0_77 = arith.constant 0 : index
    %c320_78 = arith.constant 320 : index
    %53 = vector.load %arg11[%c0_77, %c320_78] : memref<2x1024xf32, #tpu.memory_space<vmem>>, vector<2x32xf32>
    %c6_79 = arith.constant 6 : index
    %c32_80 = arith.constant 32 : index
    %54 = vector.load %arg14[%c6_79, %c32_80] : memref<18x256xf32, #tpu.memory_space<vmem>>, vector<2x32xf32>
    tpu.vector_store %arg14[%c6_79, %c32_80], %53 {strides = array<i32>} : memref<18x256xf32, #tpu.memory_space<vmem>>, vector<2x32xf32>,
    %c0_81 = arith.constant 0 : index
    %c384_82 = arith.constant 384 : index
    %55 = vector.load %arg11[%c0_81, %c384_82] : memref<2x1024xf32, #tpu.memory_space<vmem>>, vector<2x32xf32>
    %c6_83 = arith.constant 6 : index
    %c64_84 = arith.constant 64 : index
    %56 = vector.load %arg14[%c6_83, %c64_84] : memref<18x256xf32, #tpu.memory_space<vmem>>, vector<2x32xf32>
    tpu.vector_store %arg14[%c6_83, %c64_84], %55 {strides = array<i32>} : memref<18x256xf32, #tpu.memory_space<vmem>>, vector<2x32xf32>,
    %c0_85 = arith.constant 0 : index
    %c448_86 = arith.constant 448 : index
    %57 = vector.load %arg11[%c0_85, %c448_86] : memref<2x1024xf32, #tpu.memory_space<vmem>>, vector<2x32xf32>
    %c6_87 = arith.constant 6 : index
    %c96_88 = arith.constant 96 : index
    %58 = vector.load %arg14[%c6_87, %c96_88] : memref<18x256xf32, #tpu.memory_space<vmem>>, vector<2x32xf32>
    tpu.vector_store %arg14[%c6_87, %c96_88], %57 {strides = array<i32>} : memref<18x256xf32, #tpu.memory_space<vmem>>, vector<2x32xf32>,
    %c0_89 = arith.constant 0 : index
    %c512 = arith.constant 512 : index
    %59 = vector.load %arg11[%c0_89, %c512] : memref<2x1024xf32, #tpu.memory_space<vmem>>, vector<2x32xf32>
    %c6_90 = arith.constant 6 : index
    %c128_91 = arith.constant 128 : index
    %60 = vector.load %arg14[%c6_90, %c128_91] : memref<18x256xf32, #tpu.memory_space<vmem>>, vector<2x32xf32>
    tpu.vector_store %arg14[%c6_90, %c128_91], %59 {strides = array<i32>} : memref<18x256xf32, #tpu.memory_space<vmem>>, vector<2x32xf32>,
    %c0_92 = arith.constant 0 : index
    %c576 = arith.constant 576 : index
    %61 = vector.load %arg11[%c0_92, %c576] : memref<2x1024xf32, #tpu.memory_space<vmem>>, vector<2x32xf32>
    %c6_93 = arith.constant 6 : index
    %c160_94 = arith.constant 160 : index
    %62 = vector.load %arg14[%c6_93, %c160_94] : memref<18x256xf32, #tpu.memory_space<vmem>>, vector<2x32xf32>
    tpu.vector_store %arg14[%c6_93, %c160_94], %61 {strides = array<i32>} : memref<18x256xf32, #tpu.memory_space<vmem>>, vector<2x32xf32>,
    %c0_95 = arith.constant 0 : index
    %c640 = arith.constant 640 : index
    %63 = vector.load %arg11[%c0_95, %c640] : memref<2x1024xf32, #tpu.memory_space<vmem>>, vector<2x32xf32>
    %c6_96 = arith.constant 6 : index
    %c192_97 = arith.constant 192 : index
    %64 = vector.load %arg14[%c6_96, %c192_97] : memref<18x256xf32, #tpu.memory_space<vmem>>, vector<2x32xf32>
    tpu.vector_store %arg14[%c6_96, %c192_97], %63 {strides = array<i32>} : memref<18x256xf32, #tpu.memory_space<vmem>>, vector<2x32xf32>,
    %c0_98 = arith.constant 0 : index
    %c704 = arith.constant 704 : index
    %65 = vector.load %arg11[%c0_98, %c704] : memref<2x1024xf32, #tpu.memory_space<vmem>>, vector<2x32xf32>
    %c6_99 = arith.constant 6 : index
    %c224_100 = arith.constant 224 : index
    %66 = vector.load %arg14[%c6_99, %c224_100] : memref<18x256xf32, #tpu.memory_space<vmem>>, vector<2x32xf32>
    tpu.vector_store %arg14[%c6_99, %c224_100], %65 {strides = array<i32>} : memref<18x256xf32, #tpu.memory_space<vmem>>, vector<2x32xf32>,
    %c0_101 = arith.constant 0 : index
    %c272_102 = arith.constant 272 : index
    %67 = vector.load %arg11[%c0_101, %c272_102] : memref<2x1024xf32, #tpu.memory_space<vmem>>, vector<2x32xf32>
    %c8 = arith.constant 8 : index
    %c0_103 = arith.constant 0 : index
    %68 = vector.load %arg14[%c8, %c0_103] : memref<18x256xf32, #tpu.memory_space<vmem>>, vector<2x32xf32>
    tpu.vector_store %arg14[%c8, %c0_103], %67 {strides = array<i32>} : memref<18x256xf32, #tpu.memory_space<vmem>>, vector<2x32xf32>,
    %c0_104 = arith.constant 0 : index
    %c336_105 = arith.constant 336 : index
    %69 = vector.load %arg11[%c0_104, %c336_105] : memref<2x1024xf32, #tpu.memory_space<vmem>>, vector<2x32xf32>
    %c8_106 = arith.constant 8 : index
    %c32_107 = arith.constant 32 : index
    %70 = vector.load %arg14[%c8_106, %c32_107] : memref<18x256xf32, #tpu.memory_space<vmem>>, vector<2x32xf32>
    tpu.vector_store %arg14[%c8_106, %c32_107], %69 {strides = array<i32>} : memref<18x256xf32, #tpu.memory_space<vmem>>, vector<2x32xf32>,
    %c0_108 = arith.constant 0 : index
    %c400_109 = arith.constant 400 : index
    %71 = vector.load %arg11[%c0_108, %c400_109] : memref<2x1024xf32, #tpu.memory_space<vmem>>, vector<2x32xf32>
    %c8_110 = arith.constant 8 : index
    %c64_111 = arith.constant 64 : index
    %72 = vector.load %arg14[%c8_110, %c64_111] : memref<18x256xf32, #tpu.memory_space<vmem>>, vector<2x32xf32>
    tpu.vector_store %arg14[%c8_110, %c64_111], %71 {strides = array<i32>} : memref<18x256xf32, #tpu.memory_space<vmem>>, vector<2x32xf32>,
    %c0_112 = arith.constant 0 : index
    %c464_113 = arith.constant 464 : index
    %73 = vector.load %arg11[%c0_112, %c464_113] : memref<2x1024xf32, #tpu.memory_space<vmem>>, vector<2x32xf32>
    %c8_114 = arith.constant 8 : index
    %c96_115 = arith.constant 96 : index
    %74 = vector.load %arg14[%c8_114, %c96_115] : memref<18x256xf32, #tpu.memory_space<vmem>>, vector<2x32xf32>
    tpu.vector_store %arg14[%c8_114, %c96_115], %73 {strides = array<i32>} : memref<18x256xf32, #tpu.memory_space<vmem>>, vector<2x32xf32>,
    %c0_116 = arith.constant 0 : index
    %c528 = arith.constant 528 : index
    %75 = vector.load %arg11[%c0_116, %c528] : memref<2x1024xf32, #tpu.memory_space<vmem>>, vector<2x32xf32>
    %c8_117 = arith.constant 8 : index
    %c128_118 = arith.constant 128 : index
    %76 = vector.load %arg14[%c8_117, %c128_118] : memref<18x256xf32, #tpu.memory_space<vmem>>, vector<2x32xf32>
    tpu.vector_store %arg14[%c8_117, %c128_118], %75 {strides = array<i32>} : memref<18x256xf32, #tpu.memory_space<vmem>>, vector<2x32xf32>,
    %c0_119 = arith.constant 0 : index
    %c592 = arith.constant 592 : index
    %77 = vector.load %arg11[%c0_119, %c592] : memref<2x1024xf32, #tpu.memory_space<vmem>>, vector<2x32xf32>
    %c8_120 = arith.constant 8 : index
    %c160_121 = arith.constant 160 : index
    %78 = vector.load %arg14[%c8_120, %c160_121] : memref<18x256xf32, #tpu.memory_space<vmem>>, vector<2x32xf32>
    tpu.vector_store %arg14[%c8_120, %c160_121], %77 {strides = array<i32>} : memref<18x256xf32, #tpu.memory_space<vmem>>, vector<2x32xf32>,
    %c0_122 = arith.constant 0 : index
    %c656 = arith.constant 656 : index
    %79 = vector.load %arg11[%c0_122, %c656] : memref<2x1024xf32, #tpu.memory_space<vmem>>, vector<2x32xf32>
    %c8_123 = arith.constant 8 : index
    %c192_124 = arith.constant 192 : index
    %80 = vector.load %arg14[%c8_123, %c192_124] : memref<18x256xf32, #tpu.memory_space<vmem>>, vector<2x32xf32>
    tpu.vector_store %arg14[%c8_123, %c192_124], %79 {strides = array<i32>} : memref<18x256xf32, #tpu.memory_space<vmem>>, vector<2x32xf32>,
    %c0_125 = arith.constant 0 : index
    %c720 = arith.constant 720 : index
    %81 = vector.load %arg11[%c0_125, %c720] : memref<2x1024xf32, #tpu.memory_space<vmem>>, vector<2x32xf32>
    %c8_126 = arith.constant 8 : index
    %c224_127 = arith.constant 224 : index
    %82 = vector.load %arg14[%c8_126, %c224_127] : memref<18x256xf32, #tpu.memory_space<vmem>>, vector<2x32xf32>
    tpu.vector_store %arg14[%c8_126, %c224_127], %81 {strides = array<i32>} : memref<18x256xf32, #tpu.memory_space<vmem>>, vector<2x32xf32>,
    %c0_128 = arith.constant 0 : index
    %c288_129 = arith.constant 288 : index
    %83 = vector.load %arg11[%c0_128, %c288_129] : memref<2x1024xf32, #tpu.memory_space<vmem>>, vector<2x32xf32>
    %c10 = arith.constant 10 : index
    %c0_130 = arith.constant 0 : index
    %84 = vector.load %arg14[%c10, %c0_130] : memref<18x256xf32, #tpu.memory_space<vmem>>, vector<2x32xf32>
    tpu.vector_store %arg14[%c10, %c0_130], %83 {strides = array<i32>} : memref<18x256xf32, #tpu.memory_space<vmem>>, vector<2x32xf32>,
    %c0_131 = arith.constant 0 : index
    %c352_132 = arith.constant 352 : index
    %85 = vector.load %arg11[%c0_131, %c352_132] : memref<2x1024xf32, #tpu.memory_space<vmem>>, vector<2x32xf32>
    %c10_133 = arith.constant 10 : index
    %c32_134 = arith.constant 32 : index
    %86 = vector.load %arg14[%c10_133, %c32_134] : memref<18x256xf32, #tpu.memory_space<vmem>>, vector<2x32xf32>
    tpu.vector_store %arg14[%c10_133, %c32_134], %85 {strides = array<i32>} : memref<18x256xf32, #tpu.memory_space<vmem>>, vector<2x32xf32>,
    %c0_135 = arith.constant 0 : index
    %c416_136 = arith.constant 416 : index
    %87 = vector.load %arg11[%c0_135, %c416_136] : memref<2x1024xf32, #tpu.memory_space<vmem>>, vector<2x32xf32>
    %c10_137 = arith.constant 10 : index
    %c64_138 = arith.constant 64 : index
    %88 = vector.load %arg14[%c10_137, %c64_138] : memref<18x256xf32, #tpu.memory_space<vmem>>, vector<2x32xf32>
    tpu.vector_store %arg14[%c10_137, %c64_138], %87 {strides = array<i32>} : memref<18x256xf32, #tpu.memory_space<vmem>>, vector<2x32xf32>,
    %c0_139 = arith.constant 0 : index
    %c480_140 = arith.constant 480 : index
    %89 = vector.load %arg11[%c0_139, %c480_140] : memref<2x1024xf32, #tpu.memory_space<vmem>>, vector<2x32xf32>
    %c10_141 = arith.constant 10 : index
    %c96_142 = arith.constant 96 : index
    %90 = vector.load %arg14[%c10_141, %c96_142] : memref<18x256xf32, #tpu.memory_space<vmem>>, vector<2x32xf32>
    tpu.vector_store %arg14[%c10_141, %c96_142], %89 {strides = array<i32>} : memref<18x256xf32, #tpu.memory_space<vmem>>, vector<2x32xf32>,
    %c0_143 = arith.constant 0 : index
    %c544 = arith.constant 544 : index
    %91 = vector.load %arg11[%c0_143, %c544] : memref<2x1024xf32, #tpu.memory_space<vmem>>, vector<2x32xf32>
    %c10_144 = arith.constant 10 : index
    %c128_145 = arith.constant 128 : index
    %92 = vector.load %arg14[%c10_144, %c128_145] : memref<18x256xf32, #tpu.memory_space<vmem>>, vector<2x32xf32>
    tpu.vector_store %arg14[%c10_144, %c128_145], %91 {strides = array<i32>} : memref<18x256xf32, #tpu.memory_space<vmem>>, vector<2x32xf32>,
    %c0_146 = arith.constant 0 : index
    %c608 = arith.constant 608 : index
    %93 = vector.load %arg11[%c0_146, %c608] : memref<2x1024xf32, #tpu.memory_space<vmem>>, vector<2x32xf32>
    %c10_147 = arith.constant 10 : index
    %c160_148 = arith.constant 160 : index
    %94 = vector.load %arg14[%c10_147, %c160_148] : memref<18x256xf32, #tpu.memory_space<vmem>>, vector<2x32xf32>
    tpu.vector_store %arg14[%c10_147, %c160_148], %93 {strides = array<i32>} : memref<18x256xf32, #tpu.memory_space<vmem>>, vector<2x32xf32>,
    %c0_149 = arith.constant 0 : index
    %c672 = arith.constant 672 : index
    %95 = vector.load %arg11[%c0_149, %c672] : memref<2x1024xf32, #tpu.memory_space<vmem>>, vector<2x32xf32>
    %c10_150 = arith.constant 10 : index
    %c192_151 = arith.constant 192 : index
    %96 = vector.load %arg14[%c10_150, %c192_151] : memref<18x256xf32, #tpu.memory_space<vmem>>, vector<2x32xf32>
    tpu.vector_store %arg14[%c10_150, %c192_151], %95 {strides = array<i32>} : memref<18x256xf32, #tpu.memory_space<vmem>>, vector<2x32xf32>,
    %c0_152 = arith.constant 0 : index
    %c736 = arith.constant 736 : index
    %97 = vector.load %arg11[%c0_152, %c736] : memref<2x1024xf32, #tpu.memory_space<vmem>>, vector<2x32xf32>
    %c10_153 = arith.constant 10 : index
    %c224_154 = arith.constant 224 : index
    %98 = vector.load %arg14[%c10_153, %c224_154] : memref<18x256xf32, #tpu.memory_space<vmem>>, vector<2x32xf32>
    tpu.vector_store %arg14[%c10_153, %c224_154], %97 {strides = array<i32>} : memref<18x256xf32, #tpu.memory_space<vmem>>, vector<2x32xf32>,
    %c0_155 = arith.constant 0 : index
    %c512_156 = arith.constant 512 : index
    %99 = vector.load %arg11[%c0_155, %c512_156] : memref<2x1024xf32, #tpu.memory_space<vmem>>, vector<2x32xf32>
    %c12 = arith.constant 12 : index
    %c0_157 = arith.constant 0 : index
    %100 = vector.load %arg14[%c12, %c0_157] : memref<18x256xf32, #tpu.memory_space<vmem>>, vector<2x32xf32>
    tpu.vector_store %arg14[%c12, %c0_157], %99 {strides = array<i32>} : memref<18x256xf32, #tpu.memory_space<vmem>>, vector<2x32xf32>,
    %c0_158 = arith.constant 0 : index
    %c576_159 = arith.constant 576 : index
    %101 = vector.load %arg11[%c0_158, %c576_159] : memref<2x1024xf32, #tpu.memory_space<vmem>>, vector<2x32xf32>
    %c12_160 = arith.constant 12 : index
    %c32_161 = arith.constant 32 : index
    %102 = vector.load %arg14[%c12_160, %c32_161] : memref<18x256xf32, #tpu.memory_space<vmem>>, vector<2x32xf32>
    tpu.vector_store %arg14[%c12_160, %c32_161], %101 {strides = array<i32>} : memref<18x256xf32, #tpu.memory_space<vmem>>, vector<2x32xf32>,
    %c0_162 = arith.constant 0 : index
    %c640_163 = arith.constant 640 : index
    %103 = vector.load %arg11[%c0_162, %c640_163] : memref<2x1024xf32, #tpu.memory_space<vmem>>, vector<2x32xf32>
    %c12_164 = arith.constant 12 : index
    %c64_165 = arith.constant 64 : index
    %104 = vector.load %arg14[%c12_164, %c64_165] : memref<18x256xf32, #tpu.memory_space<vmem>>, vector<2x32xf32>
    tpu.vector_store %arg14[%c12_164, %c64_165], %103 {strides = array<i32>} : memref<18x256xf32, #tpu.memory_space<vmem>>, vector<2x32xf32>,
    %c0_166 = arith.constant 0 : index
    %c704_167 = arith.constant 704 : index
    %105 = vector.load %arg11[%c0_166, %c704_167] : memref<2x1024xf32, #tpu.memory_space<vmem>>, vector<2x32xf32>
    %c12_168 = arith.constant 12 : index
    %c96_169 = arith.constant 96 : index
    %106 = vector.load %arg14[%c12_168, %c96_169] : memref<18x256xf32, #tpu.memory_space<vmem>>, vector<2x32xf32>
    tpu.vector_store %arg14[%c12_168, %c96_169], %105 {strides = array<i32>} : memref<18x256xf32, #tpu.memory_space<vmem>>, vector<2x32xf32>,
    %c0_170 = arith.constant 0 : index
    %c768 = arith.constant 768 : index
    %107 = vector.load %arg11[%c0_170, %c768] : memref<2x1024xf32, #tpu.memory_space<vmem>>, vector<2x32xf32>
    %c12_171 = arith.constant 12 : index
    %c128_172 = arith.constant 128 : index
    %108 = vector.load %arg14[%c12_171, %c128_172] : memref<18x256xf32, #tpu.memory_space<vmem>>, vector<2x32xf32>
    tpu.vector_store %arg14[%c12_171, %c128_172], %107 {strides = array<i32>} : memref<18x256xf32, #tpu.memory_space<vmem>>, vector<2x32xf32>,
    %c0_173 = arith.constant 0 : index
    %c832 = arith.constant 832 : index
    %109 = vector.load %arg11[%c0_173, %c832] : memref<2x1024xf32, #tpu.memory_space<vmem>>, vector<2x32xf32>
    %c12_174 = arith.constant 12 : index
    %c160_175 = arith.constant 160 : index
    %110 = vector.load %arg14[%c12_174, %c160_175] : memref<18x256xf32, #tpu.memory_space<vmem>>, vector<2x32xf32>
    tpu.vector_store %arg14[%c12_174, %c160_175], %109 {strides = array<i32>} : memref<18x256xf32, #tpu.memory_space<vmem>>, vector<2x32xf32>,
    %c0_176 = arith.constant 0 : index
    %c896 = arith.constant 896 : index
    %111 = vector.load %arg11[%c0_176, %c896] : memref<2x1024xf32, #tpu.memory_space<vmem>>, vector<2x32xf32>
    %c12_177 = arith.constant 12 : index
    %c192_178 = arith.constant 192 : index
    %112 = vector.load %arg14[%c12_177, %c192_178] : memref<18x256xf32, #tpu.memory_space<vmem>>, vector<2x32xf32>
    tpu.vector_store %arg14[%c12_177, %c192_178], %111 {strides = array<i32>} : memref<18x256xf32, #tpu.memory_space<vmem>>, vector<2x32xf32>,
    %c0_179 = arith.constant 0 : index
    %c960 = arith.constant 960 : index
    %113 = vector.load %arg11[%c0_179, %c960] : memref<2x1024xf32, #tpu.memory_space<vmem>>, vector<2x32xf32>
    %c12_180 = arith.constant 12 : index
    %c224_181 = arith.constant 224 : index
    %114 = vector.load %arg14[%c12_180, %c224_181] : memref<18x256xf32, #tpu.memory_space<vmem>>, vector<2x32xf32>
    tpu.vector_store %arg14[%c12_180, %c224_181], %113 {strides = array<i32>} : memref<18x256xf32, #tpu.memory_space<vmem>>, vector<2x32xf32>,
    %c0_182 = arith.constant 0 : index
    %c528_183 = arith.constant 528 : index
    %115 = vector.load %arg11[%c0_182, %c528_183] : memref<2x1024xf32, #tpu.memory_space<vmem>>, vector<2x32xf32>
    %c14 = arith.constant 14 : index
    %c0_184 = arith.constant 0 : index
    %116 = vector.load %arg14[%c14, %c0_184] : memref<18x256xf32, #tpu.memory_space<vmem>>, vector<2x32xf32>
    tpu.vector_store %arg14[%c14, %c0_184], %115 {strides = array<i32>} : memref<18x256xf32, #tpu.memory_space<vmem>>, vector<2x32xf32>,
    %c0_185 = arith.constant 0 : index
    %c592_186 = arith.constant 592 : index
    %117 = vector.load %arg11[%c0_185, %c592_186] : memref<2x1024xf32, #tpu.memory_space<vmem>>, vector<2x32xf32>
    %c14_187 = arith.constant 14 : index
    %c32_188 = arith.constant 32 : index
    %118 = vector.load %arg14[%c14_187, %c32_188] : memref<18x256xf32, #tpu.memory_space<vmem>>, vector<2x32xf32>
    tpu.vector_store %arg14[%c14_187, %c32_188], %117 {strides = array<i32>} : memref<18x256xf32, #tpu.memory_space<vmem>>, vector<2x32xf32>,
    %c0_189 = arith.constant 0 : index
    %c656_190 = arith.constant 656 : index
    %119 = vector.load %arg11[%c0_189, %c656_190] : memref<2x1024xf32, #tpu.memory_space<vmem>>, vector<2x32xf32>
    %c14_191 = arith.constant 14 : index
    %c64_192 = arith.constant 64 : index
    %120 = vector.load %arg14[%c14_191, %c64_192] : memref<18x256xf32, #tpu.memory_space<vmem>>, vector<2x32xf32>
    tpu.vector_store %arg14[%c14_191, %c64_192], %119 {strides = array<i32>} : memref<18x256xf32, #tpu.memory_space<vmem>>, vector<2x32xf32>,
    %c0_193 = arith.constant 0 : index
    %c720_194 = arith.constant 720 : index
    %121 = vector.load %arg11[%c0_193, %c720_194] : memref<2x1024xf32, #tpu.memory_space<vmem>>, vector<2x32xf32>
    %c14_195 = arith.constant 14 : index
    %c96_196 = arith.constant 96 : index
    %122 = vector.load %arg14[%c14_195, %c96_196] : memref<18x256xf32, #tpu.memory_space<vmem>>, vector<2x32xf32>
    tpu.vector_store %arg14[%c14_195, %c96_196], %121 {strides = array<i32>} : memref<18x256xf32, #tpu.memory_space<vmem>>, vector<2x32xf32>,
    %c0_197 = arith.constant 0 : index
    %c784 = arith.constant 784 : index
    %123 = vector.load %arg11[%c0_197, %c784] : memref<2x1024xf32, #tpu.memory_space<vmem>>, vector<2x32xf32>
    %c14_198 = arith.constant 14 : index
    %c128_199 = arith.constant 128 : index
    %124 = vector.load %arg14[%c14_198, %c128_199] : memref<18x256xf32, #tpu.memory_space<vmem>>, vector<2x32xf32>
    tpu.vector_store %arg14[%c14_198, %c128_199], %123 {strides = array<i32>} : memref<18x256xf32, #tpu.memory_space<vmem>>, vector<2x32xf32>,
    %c0_200 = arith.constant 0 : index
    %c848 = arith.constant 848 : index
    %125 = vector.load %arg11[%c0_200, %c848] : memref<2x1024xf32, #tpu.memory_space<vmem>>, vector<2x32xf32>
    %c14_201 = arith.constant 14 : index
    %c160_202 = arith.constant 160 : index
    %126 = vector.load %arg14[%c14_201, %c160_202] : memref<18x256xf32, #tpu.memory_space<vmem>>, vector<2x32xf32>
    tpu.vector_store %arg14[%c14_201, %c160_202], %125 {strides = array<i32>} : memref<18x256xf32, #tpu.memory_space<vmem>>, vector<2x32xf32>,
    %c0_203 = arith.constant 0 : index
    %c912 = arith.constant 912 : index
    %127 = vector.load %arg11[%c0_203, %c912] : memref<2x1024xf32, #tpu.memory_space<vmem>>, vector<2x32xf32>
    %c14_204 = arith.constant 14 : index
    %c192_205 = arith.constant 192 : index
    %128 = vector.load %arg14[%c14_204, %c192_205] : memref<18x256xf32, #tpu.memory_space<vmem>>, vector<2x32xf32>
    tpu.vector_store %arg14[%c14_204, %c192_205], %127 {strides = array<i32>} : memref<18x256xf32, #tpu.memory_space<vmem>>, vector<2x32xf32>,
    %c0_206 = arith.constant 0 : index
    %c976 = arith.constant 976 : index
    %129 = vector.load %arg11[%c0_206, %c976] : memref<2x1024xf32, #tpu.memory_space<vmem>>, vector<2x32xf32>
    %c14_207 = arith.constant 14 : index
    %c224_208 = arith.constant 224 : index
    %130 = vector.load %arg14[%c14_207, %c224_208] : memref<18x256xf32, #tpu.memory_space<vmem>>, vector<2x32xf32>
    tpu.vector_store %arg14[%c14_207, %c224_208], %129 {strides = array<i32>} : memref<18x256xf32, #tpu.memory_space<vmem>>, vector<2x32xf32>,
    %c0_209 = arith.constant 0 : index
    %c544_210 = arith.constant 544 : index
    %131 = vector.load %arg11[%c0_209, %c544_210] : memref<2x1024xf32, #tpu.memory_space<vmem>>, vector<2x32xf32>
    %c16_211 = arith.constant 16 : index
    %c0_212 = arith.constant 0 : index
    %132 = vector.load %arg14[%c16_211, %c0_212] : memref<18x256xf32, #tpu.memory_space<vmem>>, vector<2x32xf32>
    tpu.vector_store %arg14[%c16_211, %c0_212], %131 {strides = array<i32>} : memref<18x256xf32, #tpu.memory_space<vmem>>, vector<2x32xf32>,
    %c0_213 = arith.constant 0 : index
    %c608_214 = arith.constant 608 : index
    %133 = vector.load %arg11[%c0_213, %c608_214] : memref<2x1024xf32, #tpu.memory_space<vmem>>, vector<2x32xf32>
    %c16_215 = arith.constant 16 : index
    %c32_216 = arith.constant 32 : index
    %134 = vector.load %arg14[%c16_215, %c32_216] : memref<18x256xf32, #tpu.memory_space<vmem>>, vector<2x32xf32>
    tpu.vector_store %arg14[%c16_215, %c32_216], %133 {strides = array<i32>} : memref<18x256xf32, #tpu.memory_space<vmem>>, vector<2x32xf32>,
    %c0_217 = arith.constant 0 : index
    %c672_218 = arith.constant 672 : index
    %135 = vector.load %arg11[%c0_217, %c672_218] : memref<2x1024xf32, #tpu.memory_space<vmem>>, vector<2x32xf32>
    %c16_219 = arith.constant 16 : index
    %c64_220 = arith.constant 64 : index
    %136 = vector.load %arg14[%c16_219, %c64_220] : memref<18x256xf32, #tpu.memory_space<vmem>>, vector<2x32xf32>
    tpu.vector_store %arg14[%c16_219, %c64_220], %135 {strides = array<i32>} : memref<18x256xf32, #tpu.memory_space<vmem>>, vector<2x32xf32>,
    %c0_221 = arith.constant 0 : index
    %c736_222 = arith.constant 736 : index
    %137 = vector.load %arg11[%c0_221, %c736_222] : memref<2x1024xf32, #tpu.memory_space<vmem>>, vector<2x32xf32>
    %c16_223 = arith.constant 16 : index
    %c96_224 = arith.constant 96 : index
    %138 = vector.load %arg14[%c16_223, %c96_224] : memref<18x256xf32, #tpu.memory_space<vmem>>, vector<2x32xf32>
    tpu.vector_store %arg14[%c16_223, %c96_224], %137 {strides = array<i32>} : memref<18x256xf32, #tpu.memory_space<vmem>>, vector<2x32xf32>,
    %c0_225 = arith.constant 0 : index
    %c800 = arith.constant 800 : index
    %139 = vector.load %arg11[%c0_225, %c800] : memref<2x1024xf32, #tpu.memory_space<vmem>>, vector<2x32xf32>
    %c16_226 = arith.constant 16 : index
    %c128_227 = arith.constant 128 : index
    %140 = vector.load %arg14[%c16_226, %c128_227] : memref<18x256xf32, #tpu.memory_space<vmem>>, vector<2x32xf32>
    tpu.vector_store %arg14[%c16_226, %c128_227], %139 {strides = array<i32>} : memref<18x256xf32, #tpu.memory_space<vmem>>, vector<2x32xf32>,
    %c0_228 = arith.constant 0 : index
    %c864 = arith.constant 864 : index
    %141 = vector.load %arg11[%c0_228, %c864] : memref<2x1024xf32, #tpu.memory_space<vmem>>, vector<2x32xf32>
    %c16_229 = arith.constant 16 : index
    %c160_230 = arith.constant 160 : index
    %142 = vector.load %arg14[%c16_229, %c160_230] : memref<18x256xf32, #tpu.memory_space<vmem>>, vector<2x32xf32>
    tpu.vector_store %arg14[%c16_229, %c160_230], %141 {strides = array<i32>} : memref<18x256xf32, #tpu.memory_space<vmem>>, vector<2x32xf32>,
    %c0_231 = arith.constant 0 : index
    %c928 = arith.constant 928 : index
    %143 = vector.load %arg11[%c0_231, %c928] : memref<2x1024xf32, #tpu.memory_space<vmem>>, vector<2x32xf32>
    %c16_232 = arith.constant 16 : index
    %c192_233 = arith.constant 192 : index
    %144 = vector.load %arg14[%c16_232, %c192_233] : memref<18x256xf32, #tpu.memory_space<vmem>>, vector<2x32xf32>
    tpu.vector_store %arg14[%c16_232, %c192_233], %143 {strides = array<i32>} : memref<18x256xf32, #tpu.memory_space<vmem>>, vector<2x32xf32>,
    %c0_234 = arith.constant 0 : index
    %c992 = arith.constant 992 : index
    %145 = vector.load %arg11[%c0_234, %c992] : memref<2x1024xf32, #tpu.memory_space<vmem>>, vector<2x32xf32>
    %c16_235 = arith.constant 16 : index
    %c224_236 = arith.constant 224 : index
    %146 = vector.load %arg14[%c16_235, %c224_236] : memref<18x256xf32, #tpu.memory_space<vmem>>, vector<2x32xf32>
    tpu.vector_store %arg14[%c16_235, %c224_236], %145 {strides = array<i32>} : memref<18x256xf32, #tpu.memory_space<vmem>>, vector<2x32xf32>,
    %c0_237 = arith.constant 0 : index
    %c0_238 = arith.constant 0 : index
    %147 = vector.load %arg14[%c0_237, %c0_238] : memref<18x256xf32, #tpu.memory_space<vmem>>, vector<18x256xf32>
    %c0_239 = arith.constant 0 : index
    %c0_240 = arith.constant 0 : index
    %148 = vector.load %arg2[%c0_239, %c0_240] : memref<256x16xf32, #tpu.memory_space<vmem>>, vector<256x16xf32>
    %cst = arith.constant dense<0.000000e+00> : vector<18x16xf32>
    %149 = tpu.matmul %147, %148, %cst {dimension_numbers = #tpu.dot_dimension_numbers<[1], [0], [0], [1], [0, 0, 1, 1], [], []>} : vector<18x256xf32>, vector<256x16xf32>, vector<18x16xf32> -> vector<18x16xf32>
    %c0_241 = arith.constant 0 : index
    %c0_242 = arith.constant 0 : index
    %150 = vector.load %arg3[%c0_241, %c0_242] : memref<1x16xf32, #tpu.memory_space<vmem>>, vector<1x16xf32>
    %151 = vector.broadcast %150 : vector<1x16xf32> to vector<18x16xf32>
    %152 = arith.addf %149, %151 : vector<18x16xf32>
    %cst_243 = arith.constant 0.000000e+00 : f32
    %153 = vector.broadcast %cst_243 : f32 to vector<18x16xf32>
    %154 = arith.maximumf %152, %153 : vector<18x16xf32>
    %c0_244 = arith.constant 0 : index
    %c0_245 = arith.constant 0 : index
    %155 = vector.load %arg16[%c0_244, %c0_245] : memref<18x16xf32, #tpu.memory_space<vmem>>, vector<18x16xf32>
    tpu.vector_store %arg16[%c0_244, %c0_245], %154 {strides = array<i32>} : memref<18x16xf32, #tpu.memory_space<vmem>>, vector<18x16xf32>,
    %cst_246 = arith.constant 0.000000e+00 : f32
    %156 = vector.broadcast %cst_246 : f32 to vector<2x400xf32>
    %c0_247 = arith.constant 0 : index
    %c0_248 = arith.constant 0 : index
    %157 = vector.load %arg12[%c0_247, %c0_248] : memref<2x400xf32, #tpu.memory_space<vmem>>, vector<2x400xf32>
    tpu.vector_store %arg12[%c0_247, %c0_248], %156 {strides = array<i32>} : memref<2x400xf32, #tpu.memory_space<vmem>>, vector<2x400xf32>,
    %c0_249 = arith.constant 0 : index
    %c0_250 = arith.constant 0 : index
    %158 = vector.load %arg16[%c0_249, %c0_250] : memref<18x16xf32, #tpu.memory_space<vmem>>, vector<2x16xf32>
    %c0_251 = arith.constant 0 : index
    %c96_252 = arith.constant 96 : index
    %159 = vector.load %arg12[%c0_251, %c96_252] : memref<2x400xf32, #tpu.memory_space<vmem>>, vector<2x16xf32>
    tpu.vector_store %arg12[%c0_251, %c96_252], %158 {strides = array<i32>} : memref<2x400xf32, #tpu.memory_space<vmem>>, vector<2x16xf32>,
    %c2_253 = arith.constant 2 : index
    %c0_254 = arith.constant 0 : index
    %160 = vector.load %arg16[%c2_253, %c0_254] : memref<18x16xf32, #tpu.memory_space<vmem>>, vector<2x16xf32>
    %c0_255 = arith.constant 0 : index
    %c112 = arith.constant 112 : index
    %161 = vector.load %arg12[%c0_255, %c112] : memref<2x400xf32, #tpu.memory_space<vmem>>, vector<2x16xf32>
    tpu.vector_store %arg12[%c0_255, %c112], %160 {strides = array<i32>} : memref<2x400xf32, #tpu.memory_space<vmem>>, vector<2x16xf32>,
    %c4_256 = arith.constant 4 : index
    %c0_257 = arith.constant 0 : index
    %162 = vector.load %arg16[%c4_256, %c0_257] : memref<18x16xf32, #tpu.memory_space<vmem>>, vector<2x16xf32>
    %c0_258 = arith.constant 0 : index
    %c128_259 = arith.constant 128 : index
    %163 = vector.load %arg12[%c0_258, %c128_259] : memref<2x400xf32, #tpu.memory_space<vmem>>, vector<2x16xf32>
    tpu.vector_store %arg12[%c0_258, %c128_259], %162 {strides = array<i32>} : memref<2x400xf32, #tpu.memory_space<vmem>>, vector<2x16xf32>,
    %c6_260 = arith.constant 6 : index
    %c0_261 = arith.constant 0 : index
    %164 = vector.load %arg16[%c6_260, %c0_261] : memref<18x16xf32, #tpu.memory_space<vmem>>, vector<2x16xf32>
    %c0_262 = arith.constant 0 : index
    %c176 = arith.constant 176 : index
    %165 = vector.load %arg12[%c0_262, %c176] : memref<2x400xf32, #tpu.memory_space<vmem>>, vector<2x16xf32>
    tpu.vector_store %arg12[%c0_262, %c176], %164 {strides = array<i32>} : memref<2x400xf32, #tpu.memory_space<vmem>>, vector<2x16xf32>,
    %c8_263 = arith.constant 8 : index
    %c0_264 = arith.constant 0 : index
    %166 = vector.load %arg16[%c8_263, %c0_264] : memref<18x16xf32, #tpu.memory_space<vmem>>, vector<2x16xf32>
    %c0_265 = arith.constant 0 : index
    %c192_266 = arith.constant 192 : index
    %167 = vector.load %arg12[%c0_265, %c192_266] : memref<2x400xf32, #tpu.memory_space<vmem>>, vector<2x16xf32>
    tpu.vector_store %arg12[%c0_265, %c192_266], %166 {strides = array<i32>} : memref<2x400xf32, #tpu.memory_space<vmem>>, vector<2x16xf32>,
    %c10_267 = arith.constant 10 : index
    %c0_268 = arith.constant 0 : index
    %168 = vector.load %arg16[%c10_267, %c0_268] : memref<18x16xf32, #tpu.memory_space<vmem>>, vector<2x16xf32>
    %c0_269 = arith.constant 0 : index
    %c208_270 = arith.constant 208 : index
    %169 = vector.load %arg12[%c0_269, %c208_270] : memref<2x400xf32, #tpu.memory_space<vmem>>, vector<2x16xf32>
    tpu.vector_store %arg12[%c0_269, %c208_270], %168 {strides = array<i32>} : memref<2x400xf32, #tpu.memory_space<vmem>>, vector<2x16xf32>,
    %c12_271 = arith.constant 12 : index
    %c0_272 = arith.constant 0 : index
    %170 = vector.load %arg16[%c12_271, %c0_272] : memref<18x16xf32, #tpu.memory_space<vmem>>, vector<2x16xf32>
    %c0_273 = arith.constant 0 : index
    %c256_274 = arith.constant 256 : index
    %171 = vector.load %arg12[%c0_273, %c256_274] : memref<2x400xf32, #tpu.memory_space<vmem>>, vector<2x16xf32>
    tpu.vector_store %arg12[%c0_273, %c256_274], %170 {strides = array<i32>} : memref<2x400xf32, #tpu.memory_space<vmem>>, vector<2x16xf32>,
    %c14_275 = arith.constant 14 : index
    %c0_276 = arith.constant 0 : index
    %172 = vector.load %arg16[%c14_275, %c0_276] : memref<18x16xf32, #tpu.memory_space<vmem>>, vector<2x16xf32>
    %c0_277 = arith.constant 0 : index
    %c272_278 = arith.constant 272 : index
    %173 = vector.load %arg12[%c0_277, %c272_278] : memref<2x400xf32, #tpu.memory_space<vmem>>, vector<2x16xf32>
    tpu.vector_store %arg12[%c0_277, %c272_278], %172 {strides = array<i32>} : memref<2x400xf32, #tpu.memory_space<vmem>>, vector<2x16xf32>,
    %c16_279 = arith.constant 16 : index
    %c0_280 = arith.constant 0 : index
    %174 = vector.load %arg16[%c16_279, %c0_280] : memref<18x16xf32, #tpu.memory_space<vmem>>, vector<2x16xf32>
    %c0_281 = arith.constant 0 : index
    %c288_282 = arith.constant 288 : index
    %175 = vector.load %arg12[%c0_281, %c288_282] : memref<2x400xf32, #tpu.memory_space<vmem>>, vector<2x16xf32>
    tpu.vector_store %arg12[%c0_281, %c288_282], %174 {strides = array<i32>} : memref<2x400xf32, #tpu.memory_space<vmem>>, vector<2x16xf32>,
    %c0_283 = arith.constant 0 : index
    %c0_284 = arith.constant 0 : index
    %176 = vector.load %arg12[%c0_283, %c0_284] : memref<2x400xf32, #tpu.memory_space<vmem>>, vector<2x64xf32>
    %c0_285 = arith.constant 0 : index
    %c0_286 = arith.constant 0 : index
    %177 = vector.load %arg15[%c0_285, %c0_286] : memref<2x256xf32, #tpu.memory_space<vmem>>, vector<2x64xf32>
    tpu.vector_store %arg15[%c0_285, %c0_286], %176 {strides = array<i32>} : memref<2x256xf32, #tpu.memory_space<vmem>>, vector<2x64xf32>,
    %c0_287 = arith.constant 0 : index
    %c80_288 = arith.constant 80 : index
    %178 = vector.load %arg12[%c0_287, %c80_288] : memref<2x400xf32, #tpu.memory_space<vmem>>, vector<2x64xf32>
    %c0_289 = arith.constant 0 : index
    %c64_290 = arith.constant 64 : index
    %179 = vector.load %arg15[%c0_289, %c64_290] : memref<2x256xf32, #tpu.memory_space<vmem>>, vector<2x64xf32>
    tpu.vector_store %arg15[%c0_289, %c64_290], %178 {strides = array<i32>} : memref<2x256xf32, #tpu.memory_space<vmem>>, vector<2x64xf32>,
    %c0_291 = arith.constant 0 : index
    %c160_292 = arith.constant 160 : index
    %180 = vector.load %arg12[%c0_291, %c160_292] : memref<2x400xf32, #tpu.memory_space<vmem>>, vector<2x64xf32>
    %c0_293 = arith.constant 0 : index
    %c128_294 = arith.constant 128 : index
    %181 = vector.load %arg15[%c0_293, %c128_294] : memref<2x256xf32, #tpu.memory_space<vmem>>, vector<2x64xf32>
    tpu.vector_store %arg15[%c0_293, %c128_294], %180 {strides = array<i32>} : memref<2x256xf32, #tpu.memory_space<vmem>>, vector<2x64xf32>,
    %c0_295 = arith.constant 0 : index
    %c240 = arith.constant 240 : index
    %182 = vector.load %arg12[%c0_295, %c240] : memref<2x400xf32, #tpu.memory_space<vmem>>, vector<2x64xf32>
    %c0_296 = arith.constant 0 : index
    %c192_297 = arith.constant 192 : index
    %183 = vector.load %arg15[%c0_296, %c192_297] : memref<2x256xf32, #tpu.memory_space<vmem>>, vector<2x64xf32>
    tpu.vector_store %arg15[%c0_296, %c192_297], %182 {strides = array<i32>} : memref<2x256xf32, #tpu.memory_space<vmem>>, vector<2x64xf32>,
    %c0_298 = arith.constant 0 : index
    %c0_299 = arith.constant 0 : index
    %184 = vector.load %arg15[%c0_298, %c0_299] : memref<2x256xf32, #tpu.memory_space<vmem>>, vector<2x256xf32>
    %c0_300 = arith.constant 0 : index
    %c0_301 = arith.constant 0 : index
    %185 = vector.load %arg4[%c0_300, %c0_301] : memref<256x32xf32, #tpu.memory_space<vmem>>, vector<256x32xf32>
    %cst_302 = arith.constant dense<0.000000e+00> : vector<2x32xf32>
    %186 = tpu.matmul %184, %185, %cst_302 {dimension_numbers = #tpu.dot_dimension_numbers<[1], [0], [0], [1], [0, 0, 1, 1], [], []>} : vector<2x256xf32>, vector<256x32xf32>, vector<2x32xf32> -> vector<2x32xf32>
    %c0_303 = arith.constant 0 : index
    %c0_304 = arith.constant 0 : index
    %187 = vector.load %arg5[%c0_303, %c0_304] : memref<1x32xf32, #tpu.memory_space<vmem>>, vector<1x32xf32>
    %188 = vector.broadcast %187 : vector<1x32xf32> to vector<2x32xf32>
    %189 = arith.addf %186, %188 : vector<2x32xf32>
    %cst_305 = arith.constant 0.000000e+00 : f32
    %190 = vector.broadcast %cst_305 : f32 to vector<2x32xf32>
    %191 = arith.maximumf %189, %190 : vector<2x32xf32>
    %c0_306 = arith.constant 0 : index
    %c0_307 = arith.constant 0 : index
    %192 = vector.load %arg17[%c0_306, %c0_307] : memref<2x32xf32, #tpu.memory_space<vmem>>, vector<2x32xf32>
    tpu.vector_store %arg17[%c0_306, %c0_307], %191 {strides = array<i32>} : memref<2x32xf32, #tpu.memory_space<vmem>>, vector<2x32xf32>,
    %c0_308 = arith.constant 0 : index
    %c0_309 = arith.constant 0 : index
    %193 = vector.load %arg17[%c0_308, %c0_309] : memref<2x32xf32, #tpu.memory_space<vmem>>, vector<2x32xf32>
    %c0_310 = arith.constant 0 : index
    %c0_311 = arith.constant 0 : index
    %194 = vector.load %arg13[%c0_310, %c0_311] : memref<2x32xf32, #tpu.memory_space<vmem>>, vector<2x32xf32>
    tpu.vector_store %arg13[%c0_310, %c0_311], %193 {strides = array<i32>} : memref<2x32xf32, #tpu.memory_space<vmem>>, vector<2x32xf32>,
    %c0_312 = arith.constant 0 : index
    %c0_313 = arith.constant 0 : index
    %195 = vector.load %arg13[%c0_312, %c0_313] : memref<2x32xf32, #tpu.memory_space<vmem>>, vector<2x32xf32>
    %c0_314 = arith.constant 0 : index
    %c0_315 = arith.constant 0 : index
    %196 = vector.load %arg6[%c0_314, %c0_315] : memref<32x32xf32, #tpu.memory_space<vmem>>, vector<32x32xf32>
    %cst_316 = arith.constant dense<0.000000e+00> : vector<2x32xf32>
    %197 = tpu.matmul %195, %196, %cst_316 {dimension_numbers = #tpu.dot_dimension_numbers<[1], [0], [0], [1], [0, 0, 1, 1], [], []>} : vector<2x32xf32>, vector<32x32xf32>, vector<2x32xf32> -> vector<2x32xf32>
    %c0_317 = arith.constant 0 : index
    %c0_318 = arith.constant 0 : index
    %198 = vector.load %arg7[%c0_317, %c0_318] : memref<1x32xf32, #tpu.memory_space<vmem>>, vector<1x32xf32>
    %199 = vector.broadcast %198 : vector<1x32xf32> to vector<2x32xf32>
    %200 = arith.addf %197, %199 : vector<2x32xf32>
    %cst_319 = arith.constant 0.000000e+00 : f32
    %201 = vector.broadcast %cst_319 : f32 to vector<2x32xf32>
    %202 = arith.maximumf %200, %201 : vector<2x32xf32>
    %c0_320 = arith.constant 0 : index
    %c0_321 = arith.constant 0 : index
    %203 = vector.load %arg8[%c0_320, %c0_321] : memref<32x7xf32, #tpu.memory_space<vmem>>, vector<32x7xf32>
    %cst_322 = arith.constant dense<0.000000e+00> : vector<2x7xf32>
    %204 = tpu.matmul %202, %203, %cst_322 {dimension_numbers = #tpu.dot_dimension_numbers<[1], [0], [0], [1], [0, 0, 1, 1], [], []>} : vector<2x32xf32>, vector<32x7xf32>, vector<2x7xf32> -> vector<2x7xf32>
    %c0_323 = arith.constant 0 : index
    %c0_324 = arith.constant 0 : index
    %205 = vector.load %arg9[%c0_323, %c0_324] : memref<1x7xf32, #tpu.memory_space<vmem>>, vector<1x7xf32>
    %206 = vector.broadcast %205 : vector<1x7xf32> to vector<2x7xf32>
    %207 = arith.addf %204, %206 : vector<2x7xf32>
    %208 = vector.extract_strided_slice %207 {offsets = [0, 0], sizes = [2, 6], strides = [1, 1]} : vector<2x7xf32> to vector<2x6xf32>
    %cst_325 = arith.constant dense<0xFF800000> : vector<2xf32>
    %209 = vector.multi_reduction <maximumf>, %208, %cst_325 [1] : vector<2x6xf32> to vector<2xf32>
    %210 = vector.shape_cast %209 : vector<2xf32> to vector<2x1xf32>
    %211 = vector.broadcast %210 : vector<2x1xf32> to vector<2x6xf32>
    %212 = arith.subf %208, %211 : vector<2x6xf32>
    %213 = math.exp %212 : vector<2x6xf32>
    %cst_326 = arith.constant dense<0.000000e+00> : vector<2xf32>
    %214 = vector.multi_reduction <add>, %213, %cst_326 [1] : vector<2x6xf32> to vector<2xf32>
    %215 = vector.shape_cast %214 : vector<2xf32> to vector<2x1xf32>
    %216 = tpu.reciprocal %215 {approx = true} : vector<2x1xf32> -> vector<2x1xf32>
    %217 = vector.broadcast %216 : vector<2x1xf32> to vector<2x6xf32>
    %218 = arith.mulf %213, %217 : vector<2x6xf32>
    %c0_327 = arith.constant 0 : index
    %c0_328 = arith.constant 0 : index
    %219 = vector.load %arg10[%c0_327, %c0_328] : memref<2x7xf32, #tpu.memory_space<vmem>>, vector<2x6xf32>
    tpu.vector_store %arg10[%c0_327, %c0_328], %218 {strides = array<i32>} : memref<2x7xf32, #tpu.memory_space<vmem>>, vector<2x6xf32>,
    %220 = vector.extract_strided_slice %207 {offsets = [0, 6], sizes = [2, 1], strides = [1, 1]} : vector<2x7xf32> to vector<2x1xf32>
    %c0_329 = arith.constant 0 : index
    %c6_330 = arith.constant 6 : index
    %221 = vector.load %arg10[%c0_329, %c6_330] : memref<2x7xf32, #tpu.memory_space<vmem>>, vector<2x1xf32>
    tpu.vector_store %arg10[%c0_329, %c6_330], %220 {strides = array<i32>} : memref<2x7xf32, #tpu.memory_space<vmem>>, vector<2x1xf32>,
    return
  }
  func.func @transform_0(%arg0: i32) -> (i32, i32) {
    %c0_i32 = arith.constant 0 : i32
    %c0_i32_0 = arith.constant 0 : i32
    %c0_i32_1 = arith.constant 0 : i32
    return %c0_i32, %c0_i32_0 : i32, i32
  }
  func.func @transform_1(%arg0: i32) -> (i32, i32) {
    %c0_i32 = arith.constant 0 : i32
    %c0_i32_0 = arith.constant 0 : i32
    %c0_i32_1 = arith.constant 0 : i32
    return %c0_i32, %c0_i32_0 : i32, i32
  }
  func.func @transform_2(%arg0: i32) -> (i32, i32) {
    %c0_i32 = arith.constant 0 : i32
    %c0_i32_0 = arith.constant 0 : i32
    %c0_i32_1 = arith.constant 0 : i32
    return %c0_i32, %c0_i32_0 : i32, i32
  }
  func.func @transform_3(%arg0: i32) -> (i32, i32) {
    %c0_i32 = arith.constant 0 : i32
    %c0_i32_0 = arith.constant 0 : i32
    %c0_i32_1 = arith.constant 0 : i32
    return %c0_i32, %c0_i32_0 : i32, i32
  }
  func.func @transform_4(%arg0: i32) -> (i32, i32) {
    %c0_i32 = arith.constant 0 : i32
    %c0_i32_0 = arith.constant 0 : i32
    %c0_i32_1 = arith.constant 0 : i32
    return %c0_i32, %c0_i32_0 : i32, i32
  }
  func.func @transform_5(%arg0: i32) -> (i32, i32) {
    %c0_i32 = arith.constant 0 : i32
    %c0_i32_0 = arith.constant 0 : i32
    %c0_i32_1 = arith.constant 0 : i32
    return %c0_i32, %c0_i32_0 : i32, i32
  }
  func.func @transform_6(%arg0: i32) -> (i32, i32) {
    %c0_i32 = arith.constant 0 : i32
    %c0_i32_0 = arith.constant 0 : i32
    %c0_i32_1 = arith.constant 0 : i32
    return %c0_i32, %c0_i32_0 : i32, i32
  }
  func.func @transform_7(%arg0: i32) -> (i32, i32) {
    %c0_i32 = arith.constant 0 : i32
    %c0_i32_0 = arith.constant 0 : i32
    %c0_i32_1 = arith.constant 0 : i32
    return %c0_i32, %c0_i32_0 : i32, i32
  }
  func.func @transform_8(%arg0: i32) -> (i32, i32) {
    %c0_i32 = arith.constant 0 : i32
    %c0_i32_0 = arith.constant 0 : i32
    %c0_i32_1 = arith.constant 0 : i32
    return %c0_i32, %c0_i32_0 : i32, i32
  }
  func.func @transform_9(%arg0: i32) -> (i32, i32) {
    %c0_i32 = arith.constant 0 : i32
    %c0_i32_0 = arith.constant 0 : i32
    %c0_i32_1 = arith.constant 0 : i32
    return %c0_i32, %c0_i32_0 : i32, i32
  }
}

</mosaic_0001>

<bundles_post_ra>
// kernel: tpu_custom_call.1
= control target key start
LH: loop header
LB: loop body
LE: loop exit
PB: predicated region body
PF: predicated region fallthrough
CT: control target
= control target key end

     0   :  { %v53_v1 = vlaneseq  ;;  %v1942_v4 = vmov 1983009808   ;;  %s2493_s0 = inlined_call_operand.vmem [shape: u8[2,1024], index: 0, kind: input, shape index: {}]   ;;  %s2494_s1 = inlined_call_operand.vmem [shape: f32[256,16], index: 1, kind: input, shape index: {}]   ;;  %s2495_s2 = inlined_call_operand.vmem [shape: f32[1,16], index: 2, kind: input, shape index: {}]   ;;  %s2496_s3 = inlined_call_operand.vmem [shape: f32[256,32], index: 3, kind: input, shape index: {}]   ;;  %s2497_s4 = inlined_call_operand.vmem [shape: f32[1,32], index: 4, kind: input, shape index: {}]   ;;  %s2498_s5 = inlined_call_operand.vmem [shape: f32[32,32], index: 5, kind: input, shape index: {}]   ;;  %s2499_s6 = inlined_call_operand.vmem [shape: f32[1,32], index: 6, kind: input, shape index: {}]   ;;  %s2500_s7 = inlined_call_operand.vmem [shape: f32[32,7], index: 7, kind: input, shape index: {}]   ;;  %s2501_s8 = inlined_call_operand.vmem [shape: f32[1,7], index: 8, kind: input, shape index: {}]   ;;  %s2502_s9 = inlined_call_operand.hbm [shape: f32[2,7], index: 9, kind: output, shape index: {}]  }
   0x1   :  { %v33_v0 = vld [vmem:[%s2493_s0] sm:$0xff]  ;;  %v51_v5 = vunpack.c.l.s4 %v1942_v4 }
   0x2   :  { %v34_v2 = vunpack.c.0.s8 %v33_v0  ;;  %v35_v3 = vunpack.c.1.s8 %v33_v0  ;;  %v36_v6 = vunpack.c.2.s8 %v33_v0 }
   0x3   :  { %14 = vsyncpa [#allocation10], 0  ;;  %v54_v7 = vshrl.u32 %v53_v1, 7  ;;  %v37_v8 = vunpack.c.3.s8 %v33_v0  ;;  %v52_v11 = vunpack.c.0.s8 %v51_v5  ;;  %s1943_s0 = smov 96   ;;  %s1944_s11 = smov 64   ;;  %v1062_v38 = vld [vmem:[%s2494_s1 + $0x80] sm:$0xff] }
   0x4   :  { %v38_v9 = vand.u32 255, %v34_v2  ;;  %v39_v10 = vand.u32 255, %v35_v3  ;;  %v40_v12 = vand.u32 255, %v36_v6  ;;  %s1945_s12 = smov 112   ;;  %v1063_v41 = vld [vmem:[%s2494_s1 + $0x88] sm:$0xff]  ;;  %v1046_v43 = vld [vmem:[%s2494_s1] sm:$0xff] }
   0x5   :  { %v41_v13 = vand.u32 255, %v37_v8  ;;  %v2007_v16 = vsub.s32 %v52_v11, %v54_v7  ;;  %v1794_v42 = vpack.c.bf16 %v1063_v41, %v1062_v38  ;;  %v1047_v45 = vld [vmem:[%s2494_s1 + $0x8] sm:$0xff]  ;;  %s1946_s21 = smov 32   ;;  %s1947_s22 = smov 80   ;;  %vm299_vm0 = vcmask 259076   ;;  %v1064_v53 = vld [vmem:[%s2494_s1 + $0x90] sm:$0xff] }
   0x6   :  { %v42_v14 = vcvt.s32.f32 %v38_v9  ;;  %v43_v15 = vcvt.s32.f32 %v39_v10  ;;  %v44_v17 = vcvt.s32.f32 %v40_v12  ;;  %v1796_v49 = vpack.c.bf16 %v1047_v45, %v1046_v43  ;;  %s1948_s25 = smov 48   ;;  %v1065_v59 = vld [vmem:[%s2494_s1 + $0x98] sm:$0xff]  ;;  %v1048_v61 = vld [vmem:[%s2494_s1 + $0x10] sm:$0xff]  ;;  %v1066_v5 = vld [vmem:[%s2494_s1 + $0xa0] sm:$0xff]  ;;  %s1949_s17 = smov 16  }
   0x7   :  { %v45_v18 = vcvt.s32.f32 %v41_v13  ;;  %1795 = vmatprep.subr.bf16.mxu0 %v1794_v42  ;;  %v1798_v60 = vpack.c.bf16 %v1065_v59, %v1064_v53  ;;  %v1049_v63 = vld [vmem:[%s2494_s1 + $0x18] sm:$0xff]  ;;  %vm85_vm1 = vcmask 254976   ;;  %v1067_v7 = vld [vmem:[%s2494_s1 + $0xa8] sm:$0xff]  ;;  %v1050_v9 = vld [vmem:[%s2494_s1 + $0x20] sm:$0xff]  ;;  %vm410_vm2 = vcmask 261126  }
   0x8   :  { %v56_v19 = vrot.slane %v42_v14, %v2007_v16  ;;  %v63_v20 = vrot.slane %v43_v15, %v2007_v16  ;;  %v71_v21 = vrot.slane %v44_v17, %v2007_v16  ;;  %1797 = vmatpush3.bf16.msra.mxu0 %v1796_v49  ;;  %v1800_v1 = vpack.c.bf16 %v1049_v63, %v1048_v61  ;;  %v1051_v17 = vld [vmem:[%s2494_s1 + $0x28] sm:$0xff]  ;;  %v1054_v38 = vld [vmem:[%s2494_s1 + $0x40] sm:$0xff]  ;;  %v1072_v43 = vld [vmem:[%s2494_s1 + $0xd0] sm:$0xff] }
   0x9   :  { %v78_v22 = vrot.slane %v45_v18, %v2007_v16  ;;  %1799 = vmatprep.subr.bf16.mxu0 %v1798_v60  ;;  %v1802_v8 = vpack.c.bf16 %v1067_v7, %v1066_v5  ;;  %v1059_v63 = vld [vmem:[%s2494_s1 + $0x68] sm:$0xff]  ;;  %v1060_v7 = vld [vmem:[%s2494_s1 + $0x70] sm:$0xff]  ;;  %vm99_vm3 = vcmask 517376   ;;  %vm113_vm4 = vcmask 779776  }
   0xa   :  { %v64_v23 = vcombine.low %v56_v19, %v63_v20  ;;  %v1804_v20 = vpack.c.bf16 %v1051_v17, %v1050_v9  ;;  %vm314_vm5 = vcmask 521476   ;;  %vm183_vm6 = vcmask 257026  }
   0xb   :  { %v79_v24 = vcombine.low %v71_v21, %v78_v22  ;;  %v1068_v21 = vld [vmem:[%s2494_s1 + $0xb0] sm:$0xff]  ;;  %v1069_v22 = vld [vmem:[%s2494_s1 + $0xb8] sm:$0xff]  ;;  %vm329_vm7 = vcmask 783876   ;;  %vm342_vm8 = vcmask 1046276   ;;  %vm198_vm9 = vcmask 519426  }
   0xc   :  { %82 = vst [vmem:[#allocation2] sm:$0xff] %v64_v23  ;;  %1801 = vmatpush3.bf16.msra.mxu0 %v1800_v1  ;;  %vm213_vm10 = vcmask 781826   ;;  %vm426_vm11 = vcmask 523526   ;;  %vm442_vm12 = vcmask 785926   ;;  %vm127_vm13 = vcmask 1042176  }
   0xd   :  { %83 = vst [vmem:[#allocation2 + $0x8] sm:$0xff] %v79_v24  ;;  %1803 = vmatprep.subr.bf16.mxu0 %v1802_v8  ;;  %v1806_v24 = vpack.c.bf16 %v1069_v22, %v1068_v21  ;;  %v1061_v8 = vld [vmem:[%s2494_s1 + $0x78] sm:$0xff]  ;;  %vm228_vm14 = vcmask 1044226   ;;  %vm458_vm15 = vcmask 1048326  }
  0x10   :  { %1805 = vmatpush3.bf16.msra.mxu0 %v1804_v20 }
  0x11   :  { %1807 = vmatprep.subr.bf16.mxu0 %v1806_v24 }
  0x13   :  { %v2013_v25 = vld.sshfl [vmem:[#allocation2 + $0x4] sm:$0x3 pattern:$0x76325410]  ;;  %v84_v12 = vld [vmem:[#allocation2] sm:$0x3] }
  0x14   :  { %140 = vrot.lane.b32.xlu1 %v2013_v25, %s1943_s0  ;;  %v1636_v26 = vld.sshfl [vmem:[#allocation2] sm:$0x3 pattern:$0x76325410]  ;;  %v353_v28 = vcombine.low %v2013_v25, %v2013_v25  ;;  %v129_v11 = vld [vmem:[#allocation2 + $0x4] sm:$0x3] }
  0x15   :  { %96 = vrot.lane.b32.xlu0 %v1636_v26, %s1943_s0  ;;  %v2018_v27 = vld.sshfl [vmem:[#allocation2 + $0x6] sm:$0x3 pattern:$0x76325410]  ;;  %v295_v29 = vcombine.low %v1636_v26, %v1636_v26  ;;  %130 = vst.msk [vmem:[#allocation5 + $0x8] sm:$0x3] %vm85_vm1, %v129_v11 }
  0x16   :  { %v1882_v30 = vld [vmem:[#allocation2] ss:$0 sps:$4 sm:$0x33]   ;;  %v1883_v31 = vld [vmem:[#allocation2 + $0x4] ss:$0 sps:$4 sm:$0x33]   ;;  %v2032_v36 = vcombine.low %v2018_v27, %v2018_v27 }
  0x17   :  { %v179_v32 = vrot.slane %v1882_v30, %v2007_v16  ;;  %v239_v33 = vrot.slane %v1883_v31, %v2007_v16  ;;  %v1884_v34 = vld [vmem:[#allocation2 + $0x4] ss:$0 sps:$4 sm:$0x33]   ;;  %v1885_v35 = vld [vmem:[#allocation2 + $0x6] ss:$0 sps:$4 sm:$0x33]  }
  0x18   :  { %153 = vrot.lane.b32.xlu1 %v2018_v27, %s1944_s11  ;;  %v1887_v37 = vld [vmem:[#allocation2 + $0x8] ss:$0 sps:$4 sm:$0x33]   ;;  %v253_v39 = vrot.slane %v1884_v34, %v2007_v16  ;;  %v1886_v40 = vld [vmem:[#allocation2] ss:$0 sps:$4 sm:$0x33]   ;;  %v267_v46 = vrot.slane %v1885_v35, %v2007_v16 }
  0x19   :  { %354 = vrot.lane.b32.xlu0 %v353_v28, %s1943_s0  ;;  %v1888_v44 = vld [vmem:[#allocation2 + $0xa] ss:$0 sps:$4 sm:$0x33]   ;;  %v482_v47 = vrot.slane %v1887_v37, %v2007_v16  ;;  %v194_v50 = vrot.slane %v1886_v40, %v2007_v16  ;;  %v1889_v51 = vld [vmem:[#allocation2 + $0x4] ss:$0 sps:$4 sm:$0x33]  }
  0x1a   :  { %v2052_v48 = vld.sshfl [vmem:[#allocation2 + $0x8] sm:$0x3 pattern:$0x76325410]  ;;  %v497_v56 = vrot.slane %v1888_v44, %v2007_v16  ;;  %v421_v58 = vrot.slane %v1889_v51, %v2007_v16  ;;  %86 = vst.msk [vmem:[#allocation5] sm:$0x3] %vm85_vm1, %v84_v12 }
  0x1b   :  { %v2058_v52 = vcombine.low %v2052_v48, %v2052_v48  ;;  %v2063_v54 = vld.sshfl [vmem:[#allocation2 + $0xc] sm:$0x3 pattern:$0x76325410]  ;;  %v483_v55 = vcombine.low %v482_v47, %v482_v47  ;;  %v1052_v26 = vld [vmem:[%s2494_s1 + $0x30] sm:$0xff]  ;;  %v1073_v44 = vld [vmem:[%s2494_s1 + $0xd8] sm:$0xff] }
  0x1c   :  { %296 = vrot.lane.b32.xlu1 %v295_v29, %s1943_s0  ;;  %v2071_v57 = vcombine.low %v2063_v54, %v2063_v54  ;;  %v498_v62 = vcombine.low %v497_v56, %v497_v56  ;;  %v422_v0 = vcombine.low %v421_v58, %v421_v58  ;;  %v1890_v2 = vld [vmem:[#allocation2 + $0x6] ss:$0 sps:$4 sm:$0x33]   ;;  %v1891_v6 = vld [vmem:[#allocation2 + $0x2] ss:$0 sps:$4 sm:$0x33]   ;;  %v1814_v49 = vpack.c.bf16 %v1073_v44, %v1072_v43 }
  0x1d   :  { %368 = vrot.lane.b32.xlu0 %v353_v28, %s1944_s11  ;;  %741 = vst.msk [vmem:[#allocation5 + $0x10] sm:$0x30] %vm299_vm0, %v2058_v52  ;;  %v2089_v3 = vld.sshfl [vmem:[#allocation2 + $0x2] sm:$0x3 pattern:$0x76325410]  ;;  %v281_v13 = vrot.slane %v1890_v2, %v2007_v16  ;;  %v209_v18 = vrot.slane %v1891_v6, %v2007_v16 }
  0x1e   :  { %795 = vst.msk [vmem:[#allocation5 + $0x18] sm:$0x30] %vm299_vm0, %v2071_v57  ;;  %v1892_v4 = vld [vmem:[#allocation2 + $0x6] ss:$0 sps:$4 sm:$0x33]   ;;  %v1053_v28 = vld [vmem:[%s2494_s1 + $0x38] sm:$0xff]  ;;  %v2143_v40 = vcombine.low %v2089_v3, %v2089_v3 }
  0x1f   :  { %v1893_v10 = vld [vmem:[#allocation2 + $0xa] ss:$0 sps:$4 sm:$0x33]   ;;  %v437_v14 = vrot.slane %v1892_v4, %v2007_v16  ;;  %v1910_v15 = vld [vmem:[#allocation2 + $0x8] ss:$0 sps:$4 sm:$0x33]   ;;  %v1808_v31 = vpack.c.bf16 %v1053_v28, %v1052_v26 }
  0x20   :  { %180 = vrot.lane.b32.xlu1 %v179_v32, %s1945_s12  ;;  %v1911_v19 = vld [vmem:[#allocation2 + $0x4] ss:$0 sps:$4 sm:$0x33]   ;;  %v469_v23 = vrot.slane %v1910_v15, %v2007_v16  ;;  %v1071_v32 = vld [vmem:[%s2494_s1 + $0xc8] sm:$0xff]  ;;  %v512_v41 = vrot.slane %v1893_v10, %v2007_v16  ;;  %v1076_v2 = vld [vmem:[%s2494_s1 + $0xf0] sm:$0xff]  ;;  %v1824_v10 = vpack.c.bf16 %v1061_v8, %v1060_v7 }
  0x21   :  { %240 = vrot.lane.b32.xlu0 %v239_v33, %s1945_s12  ;;  %v407_v30 = vrot.slane %v1911_v19, %v2007_v16  ;;  %v438_v33 = vcombine.low %v437_v14, %v437_v14  ;;  %v1894_v34 = vld [vmem:[#allocation2 + $0x6] ss:$0 sps:$4 sm:$0x33]   ;;  %1809 = vmatpush3.bf16.msra.mxu0 %v1808_v31  ;;  %v1895_v53 = vld [vmem:[#allocation2 + $0x2] ss:$0 sps:$4 sm:$0x33]  }
  0x22   :  { %v470_v35 = vcombine.low %v469_v23, %v469_v23  ;;  %v453_v47 = vrot.slane %v1894_v34, %v2007_v16  ;;  %v513_v51 = vcombine.low %v512_v41, %v512_v41  ;;  %v1075_v56 = vld [vmem:[%s2494_s1 + $0xe8] sm:$0xff]  ;;  %v1898_v11 = vld [vmem:[#allocation2 + $0x4] ss:$0 sps:$4 sm:$0x33]  }
  0x23   :  { %v408_v42 = vcombine.low %v407_v30, %v407_v30  ;;  %v1896_v60 = vld [vmem:[#allocation2 + $0x8] ss:$0 sps:$4 sm:$0x33]   ;;  %v1897_v1 = vld [vmem:[#allocation2 + $0xc] ss:$0 sps:$4 sm:$0x33]  }
  0x24   :  { %382 = vrot.lane.b32.xlu1 %v2032_v36, %s1946_s21  ;;  %472 = vst.msk [vmem:[#allocation5 + $0x8] sm:$0xc0] %vm410_vm2, %v470_v35  ;;  %v454_v59 = vcombine.low %v453_v47, %v453_v47  ;;  %v685_v5 = vrot.slane %v1896_v60, %v2007_v16  ;;  %v907_v9 = vrot.slane %v1897_v1, %v2007_v16  ;;  %v1900_v14 = vld [vmem:[#allocation2 + $0xc] ss:$0 sps:$4 sm:$0x33]  }
  0x25   :  { %254 = vrot.lane.b32.xlu0 %v253_v39, %s1947_s22  ;;  %v1055_v39 = vld [vmem:[%s2494_s1 + $0x48] sm:$0xff]  ;;  %411 = vst.msk [vmem:[#allocation5] sm:$0xc0] %vm410_vm2, %v408_v42  ;;  %v1903_v26 = vld [vmem:[#allocation2 + $0x4] ss:$0 sps:$4 sm:$0x33]  }
  0x26   :  { %v1812_v45 = vpack.c.bf16 %v1055_v39, %v1054_v38  ;;  %v908_v12 = vcombine.low %v907_v9, %v907_v9  ;;  %v1899_v15 = vld [vmem:[#allocation2 + $0x8] ss:$0 sps:$4 sm:$0x33]   ;;  %v1902_v24 = vld [vmem:[#allocation2 + $0xa] ss:$0 sps:$4 sm:$0x33]  }
  0x27   :  { %v1901_v17 = vld [vmem:[#allocation2 + $0x8] ss:$0 sps:$4 sm:$0x33]   ;;  %v699_v19 = vrot.slane %v1899_v15, %v2007_v16  ;;  %v1904_v30 = vld [vmem:[#allocation2 + $0xe] ss:$0 sps:$4 sm:$0x33]  }
  0x28   :  { %268 = vrot.lane.b32.xlu1 %v267_v46, %s1948_s25  ;;  %v1056_v46 = vld [vmem:[%s2494_s1 + $0x50] sm:$0xff]  ;;  %v847_v20 = vrot.slane %v1901_v17, %v2007_v16  ;;  %v1656_v23 = vld.sshfl [vmem:[#allocation2 + $0xa] sm:$0x3 pattern:$0x76325410] }
  0x29   :  { %195 = vrot.lane.b32.xlu0 %v194_v50, %s1947_s22  ;;  %v1057_v50 = vld [vmem:[%s2494_s1 + $0x58] sm:$0xff]  ;;  %v1664_v28 = vld.sshfl [vmem:[#allocation2 + $0xe] sm:$0x3 pattern:$0x76325410]  ;;  %v765_v39 = vcombine.low %v1656_v23, %v1656_v23 }
  0x2a   :  { %v1816_v58 = vpack.c.bf16 %v1057_v50, %v1056_v46  ;;  %v848_v22 = vcombine.low %v847_v20, %v847_v20  ;;  %v1905_v31 = vld [vmem:[#allocation2 + $0x8] ss:$0 sps:$4 sm:$0x33]   ;;  %v1906_v38 = vld [vmem:[#allocation2 + $0x6] ss:$0 sps:$4 sm:$0x33]  }
  0x2b   :  { %v862_v34 = vrot.slane %v1905_v31, %v2007_v16  ;;  %v659_v42 = vrot.slane %v1906_v38, %v2007_v16  ;;  %v1908_v43 = vld [vmem:[#allocation2 + $0xe] ss:$0 sps:$4 sm:$0x33]   ;;  %v1909_v44 = vld [vmem:[#allocation2 + $0xa] ss:$0 sps:$4 sm:$0x33]  }
  0x2c   :  { %484 = vrot.lane.b32.xlu1 %v483_v55, %s1943_s0  ;;  %v1074_v55 = vld [vmem:[%s2494_s1 + $0xe0] sm:$0xff]  ;;  %v892_v46 = vrot.slane %v1909_v44, %v2007_v16 }
  0x2d   :  { %311 = vrot.lane.b32.xlu0 %v295_v29, %s1944_s11  ;;  %v1070_v29 = vld [vmem:[%s2494_s1 + $0xc0] sm:$0xff]  ;;  %v1818_v61 = vpack.c.bf16 %v1075_v56, %v1074_v55 }
  0x2e   :  { %v1810_v37 = vpack.c.bf16 %v1071_v32, %v1070_v29  ;;  %v713_v29 = vrot.slane %v1902_v24, %v2007_v16  ;;  %v819_v32 = vcombine.low %v1664_v28, %v1664_v28 }
  0x30   :  { %499 = vrot.lane.b32.xlu1 %v498_v62, %s1944_s11  ;;  %1811 = vmatprep.subr.bf16.mxu0 %v1810_v37  ;;  %v1058_v62 = vld [vmem:[%s2494_s1 + $0x60] sm:$0xff]  ;;  %v863_v37 = vcombine.low %v862_v34, %v862_v34 }
  0x31   :  { %423 = vrot.lane.b32.xlu0 %v422_v0, %s1943_s0  ;;  %1813 = vmatpush3.bf16.msra.mxu0 %v1812_v45  ;;  %v224_v0 = vrot.slane %v1895_v53, %v2007_v16  ;;  %v1820_v4 = vpack.c.bf16 %v1059_v63, %v1058_v62  ;;  %v952_v45 = vrot.slane %v1908_v43, %v2007_v16  ;;  %v1913_v34 = vld [vmem:[#allocation2 + $0x6] ss:$0 sps:$4 sm:$0x33]  }
  0x32   :  { %1815 = vmatprep.subr.bf16.mxu0 %v1814_v49  ;;  %v893_v49 = vcombine.low %v892_v46, %v892_v46 }
  0x33   :  { %v953_v47 = vcombine.low %v952_v45, %v952_v45 }
  0x34   :  { %166 = vrot.lane.b32.xlu1 %v2018_v27, %s1946_s21 }
  0x35   :  { %110 = vrot.lane.b32.xlu0 %v2089_v3, %s1944_s11  ;;  %1817 = vmatpush3.bf16.msra.mxu0 %v1816_v58 }
  0x36   :  { %1819 = vmatprep.subr.bf16.mxu0 %v1818_v61 }
  0x38   :  { %282 = vrot.lane.b32.xlu1 %v281_v13, %s1949_s17  ;;  %v631_v13 = vrot.slane %v1898_v11, %v2007_v16 }
  0x39   :  { %210 = vrot.lane.b32.xlu0 %v209_v18, %s1948_s25  ;;  %1821 = vmatpush3.bf16.msra.mxu0 %v1820_v4  ;;  %v922_v18 = vrot.slane %v1900_v14, %v2007_v16 }
  0x3b   :  { %v923_v21 = vcombine.low %v922_v18, %v922_v18 }
  0x3c   :  { %439 = vrot.lane.b32.xlu1 %v438_v33, %s1944_s11  ;;  %v937_v33 = vrot.slane %v1904_v30, %v2007_v16 }
  0x3d   :  { %326 = vrot.lane.b32.xlu0 %v2143_v40, %s1946_s21 }
  0x3e   :  { %v938_v35 = vcombine.low %v937_v33, %v937_v33 }
  0x40   :  { %124 = vrot.lane.b32.xlu1 %v2089_v3, %s1946_s21  ;;  %v1077_v3 = vld [vmem:[%s2494_s1 + $0xf8] sm:$0xff] }
  0x41   :  { %514 = vrot.lane.b32.xlu0 %v513_v51, %s1946_s21  ;;  %v1822_v6 = vpack.c.bf16 %v1077_v3, %v1076_v2 }
  0x43   :  { %1823 = vmatprep.subr.bf16.mxu0 %v1822_v6 }
  0x44   :  { %455 = vrot.lane.b32.xlu1 %v454_v59, %s1946_s21  ;;  %1825 = vmatpush3.bf16.msra.mxu0 %v1824_v10 }
  0x45   :  { %225 = vrot.lane.b32.xlu0 %v224_v0, %s1949_s17 }
  0x48   :  { %686 = vrot.lane.b32.xlu1 %v685_v5, %s1943_s0 }
  0x49   :  { %579 = vrot.lane.b32.xlu0 %v2052_v48, %s1945_s12 }
  0x4c   :  { %527 = vrot.lane.b32.xlu1 %v2013_v25, %s1945_s12 }
  0x4d   :  { %909 = vrot.lane.b32.xlu0 %v908_v12, %s1945_s12 }
  0x50   :  { %632 = vrot.lane.b32.xlu1 %v631_v13, %s1943_s0 }
  0x51   :  { %592 = vrot.lane.b32.xlu0 %v2052_v48, %s1947_s22 }
  0x54   :  { %806 = vrot.lane.b32.xlu1 %v2071_v57, %s1943_s0  ;;  %v645_v57 = vrot.slane %v1903_v26, %v2007_v16 }
  0x55   :  { %700 = vrot.lane.b32.xlu0 %v699_v19, %s1944_s11 }
  0x58   :  { %924 = vrot.lane.b32.xlu1 %v923_v21, %s1947_s22 }
  0x59   :  { %849 = vrot.lane.b32.xlu0 %v848_v22, %s1945_s12 }
  0x5c   :  { %605 = vrot.lane.b32.xlu1 %v1656_v23, %s1948_s25 }
  0x5d   :  { %540 = vrot.lane.b32.xlu0 %v2013_v25, %s1947_s22  ;;  %v1907_v25 = vld [vmem:[#allocation2 + $0xa] ss:$0 sps:$4 sm:$0x33]  }
  0x5e   :  { %v877_v41 = vrot.slane %v1907_v25, %v2007_v16  ;;  %v673_v25 = vrot.slane %v1913_v34, %v2007_v16 }
  0x60   :  { %714 = vrot.lane.b32.xlu1 %v713_v29, %s1946_s21 }
  0x61   :  { %646 = vrot.lane.b32.xlu0 %v645_v57, %s1944_s11 }
  0x64   :  { %820 = vrot.lane.b32.xlu1 %v819_v32, %s1944_s11 }
  0x65   :  { %752 = vrot.lane.b32.xlu0 %v2058_v52, %s1943_s0  ;;  %v878_v52 = vcombine.low %v877_v41, %v877_v41 }
  0x68   :  { %939 = vrot.lane.b32.xlu1 %v938_v35, %s1948_s25 }
  0x69   :  { %864 = vrot.lane.b32.xlu0 %v863_v37, %s1947_s22 }
  0x6c   :  { %618 = vrot.lane.b32.xlu1 %v1656_v23, %s1949_s17 }
  0x6d   :  { %553 = vrot.lane.b32.xlu0 %v2018_v27, %s1948_s25 }
  0x70   :  { %766 = vrot.lane.b32.xlu1 %v765_v39, %s1944_s11 }
  0x71   :  { %660 = vrot.lane.b32.xlu0 %v659_v42, %s1946_s21 }
  0x74   :  { %879 = vrot.lane.b32.xlu1 %v878_v52, %s1948_s25 }
  0x75   :  { %834 = vrot.lane.b32.xlu0 %v819_v32, %s1946_s21 }
  0x78   :  { %566 = vrot.lane.b32.xlu1 %v2018_v27, %s1949_s17 }
  0x79   :  { %954 = vrot.lane.b32.xlu0 %v953_v47, %s1949_s17 }
  0x7c   :  { %894 = vrot.lane.b32.xlu1 %v893_v49, %s1949_s17 }
  0x7d   :  { %780 = vrot.lane.b32.xlu0 %v765_v39, %s1946_s21 }
  0x80   :  { %967 = vrot.lane.b32.xlu1 %v2052_v48, %s1943_s0 }
  0x81   :  { %1008 = vrot.lane.b32.xlu0 %v2063_v54, %s1943_s0 }
  0x84   :  { %980 = vrot.lane.b32.xlu1 %v2052_v48, %s1944_s11 }
  0x85   :  { %1021 = vrot.lane.b32.xlu0 %v2063_v54, %s1944_s11 }
  0x86   :  { %v141_v27 = vpop.permute.xlu1 %140 }
  0x87   :  { %143 = vst.msk [vmem:[#allocation5 + $0x8] sm:$0x3] %vm99_vm3, %v141_v27  ;;  %v97_v50 = vpop.permute.xlu0 %96 }
  0x88   :  { %100 = vst.msk [vmem:[#allocation5] sm:$0x3] %vm99_vm3, %v97_v50  ;;  %993 = vrot.lane.b32.xlu1 %v1656_v23, %s1946_s21  ;;  %v1912_v23 = vld [vmem:[#allocation2 + $0xa] ss:$0 sps:$4 sm:$0x33]  }
  0x89   :  { %1034 = vrot.lane.b32.xlu0 %v1664_v28, %s1946_s21  ;;  %v727_v28 = vrot.slane %v1912_v23, %v2007_v16  ;;  %v1330_v23 = vld [vmem:[%s2496_s3 + $0x90] sm:$0xff] }
  0x8a   :  { %v154_v51 = vpop.permute.xlu1 %153 }
  0x8b   :  { %156 = vst.msk [vmem:[#allocation5 + $0x8] sm:$0x3] %vm113_vm4, %v154_v51  ;;  %v355_v53 = vpop.permute.xlu0 %354  ;;  %v997_v51 = vld [vmem:[#allocation2 + $0xa] sm:$0x3] }
  0x8c   :  { %357 = vst.msk [vmem:[#allocation5 + $0x8] sm:$0x30] %vm299_vm0, %v355_v53  ;;  %v1038_v53 = vld [vmem:[#allocation2 + $0xe] sm:$0x3] }
  0x8e   :  { %v297_v48 = vpop.permute.xlu1 %296 }
  0x8f   :  { %300 = vst.msk [vmem:[#allocation5] sm:$0x30] %vm299_vm0, %v297_v48  ;;  %v369_v54 = vpop.permute.xlu0 %368  ;;  %vm1173_vm0 = vcmask 1041408  }
  0x90   :  { %371 = vst.msk [vmem:[#allocation5 + $0x8] sm:$0x30] %vm314_vm5, %v369_v54 }
  0x92   :  { %v181_v55 = vpop.permute.xlu1 %180 }
  0x93   :  { %184 = vst.msk [vmem:[#allocation5] sm:$0xc] %vm183_vm6, %v181_v55  ;;  %v241_v56 = vpop.permute.xlu0 %240 }
  0x94   :  { %243 = vst.msk [vmem:[#allocation5 + $0x8] sm:$0xc] %vm183_vm6, %v241_v56 }
  0x96   :  { %v383_v58 = vpop.permute.xlu1 %382 }
  0x97   :  { %385 = vst.msk [vmem:[#allocation5 + $0x8] sm:$0x30] %vm329_vm7, %v383_v58  ;;  %v255_v59 = vpop.permute.xlu0 %254  ;;  %v1950_v58 = vmov 0.0  }
  0x98   :  { %397 = vst.msk [vmem:[#allocation5 + $0x8] sm:$0x30] %vm342_vm8, %v2032_v36 }
  0x99   :  { %257 = vst.msk [vmem:[#allocation5 + $0x8] sm:$0xc] %vm198_vm9, %v255_v59 }
  0x9a   :  { %v269_v60 = vpop.permute.xlu1 %268 }
  0x9b   :  { %271 = vst.msk [vmem:[#allocation5 + $0x8] sm:$0xc] %vm213_vm10, %v269_v60  ;;  %v196_v61 = vpop.permute.xlu0 %195  ;;  %v1672_v60 = vld [vmem:[%s2495_s2] ss:$0 sm:$0xff] }
  0x9c   :  { %199 = vst.msk [vmem:[#allocation5] sm:$0xc] %vm198_vm9, %v196_v61 }
  0x9e   :  { %v485_v62 = vpop.permute.xlu1 %484 }
  0x9f   :  { %487 = vst.msk [vmem:[#allocation5 + $0x8] sm:$0xc0] %vm426_vm11, %v485_v62  ;;  %v312_v63 = vpop.permute.xlu0 %311 }
  0xa0   :  { %315 = vst.msk [vmem:[#allocation5] sm:$0x30] %vm314_vm5, %v312_v63 }
  0xa2   :  { %v500_v0 = vpop.permute.xlu1 %499 }
  0xa3   :  { %502 = vst.msk [vmem:[#allocation5 + $0x8] sm:$0xc0] %vm442_vm12, %v500_v0  ;;  %v424_v36 = vpop.permute.xlu0 %423 }
  0xa4   :  { %427 = vst.msk [vmem:[#allocation5] sm:$0xc0] %vm426_vm11, %v424_v36 }
  0xa6   :  { %v167_v1 = vpop.permute.xlu1 %166 }
  0xa7   :  { %169 = vst.msk [vmem:[#allocation5 + $0x8] sm:$0x3] %vm127_vm13, %v167_v1  ;;  %v111_v2 = vpop.permute.xlu0 %110 }
  0xa8   :  { %114 = vst.msk [vmem:[#allocation5] sm:$0x3] %vm113_vm4, %v111_v2 }
  0xaa   :  { %v283_v3 = vpop.permute.xlu1 %282 }
  0xab   :  { %285 = vst.msk [vmem:[#allocation5 + $0x8] sm:$0xc] %vm228_vm14, %v283_v3  ;;  %v211_v4 = vpop.permute.xlu0 %210 }
  0xac   :  { %214 = vst.msk [vmem:[#allocation5] sm:$0xc] %vm213_vm10, %v211_v4 }
  0xae   :  { %v440_v5 = vpop.permute.xlu1 %439 }
  0xaf   :  { %443 = vst.msk [vmem:[#allocation5] sm:$0xc0] %vm442_vm12, %v440_v5  ;;  %v327_v6 = vpop.permute.xlu0 %326 }
  0xb0   :  { %330 = vst.msk [vmem:[#allocation5] sm:$0x30] %vm329_vm7, %v327_v6 }
  0xb1   :  { %343 = vst.msk [vmem:[#allocation5] sm:$0x30] %vm342_vm8, %v2143_v40 }
  0xb2   :  { %v125_v7 = vpop.permute.xlu1 %124 }
  0xb3   :  { %128 = vst.msk [vmem:[#allocation5] sm:$0x3] %vm127_vm13, %v125_v7  ;;  %v515_v8 = vpop.permute.xlu0 %514 }
  0xb4   :  { %517 = vst.msk [vmem:[#allocation5 + $0x8] sm:$0xc0] %vm458_vm15, %v515_v8 }
  0xb6   :  { %v456_v9 = vpop.permute.xlu1 %455 }
  0xb7   :  { %459 = vst.msk [vmem:[#allocation5] sm:$0xc0] %vm458_vm15, %v456_v9  ;;  %v226_v10 = vpop.permute.xlu0 %225 }
  0xb8   :  { %229 = vst.msk [vmem:[#allocation5] sm:$0xc] %vm228_vm14, %v226_v10 }
  0xba   :  { %v687_v11 = vpop.permute.xlu1 %686 }
  0xbb   :  { %689 = vst.msk [vmem:[#allocation5 + $0x18] sm:$0xc] %vm183_vm6, %v687_v11  ;;  %v580_v12 = vpop.permute.xlu0 %579  ;;  %v1041_v13 = vld [vmem:[#allocation5 + $0x8] sm:$0xff] }
  0xbc   :  { %582 = vst.msk [vmem:[#allocation5 + $0x18] sm:$0x3] %vm85_vm1, %v580_v12  ;;  %1149 = vmatprep.mubr.f32.mxu0 %v1041_v13 }
  0xbe   :  { %v528_v40 = vpop.permute.xlu1 %527 }
  0xbf   :  { %530 = vst.msk [vmem:[#allocation5 + $0x10] sm:$0x3] %vm85_vm1, %v528_v40  ;;  %v910_v14 = vpop.permute.xlu0 %909  ;;  %v1040_v15 = vld [vmem:[#allocation5] sm:$0xff] }
  0xc0   :  { %912 = vst.msk [vmem:[#allocation5 + $0x18] sm:$0xc0] %vm410_vm2, %v910_v14  ;;  %1150 = vmatmul.mubr.f32.vlgmr.msra.gmra.mrb[0].mxu0 %v1040_v15 }
  0xc2   :  { %v633_v17 = vpop.permute.xlu1 %632 }
  0xc3   :  { %635 = vst.msk [vmem:[#allocation5 + $0x10] sm:$0xc] %vm183_vm6, %v633_v17  ;;  %v593_v18 = vpop.permute.xlu0 %592 }
  0xc4   :  { %595 = vst.msk [vmem:[#allocation5 + $0x18] sm:$0x3] %vm99_vm3, %v593_v18  ;;  %v1328_v18 = vld [vmem:[%s2496_s3 + $0x80] sm:$0xff] }
  0xc6   :  { %v807_v19 = vpop.permute.xlu1 %806 }
  0xc7   :  { %809 = vst.msk [vmem:[#allocation5 + $0x18] sm:$0x30] %vm314_vm5, %v807_v19  ;;  %v701_v20 = vpop.permute.xlu0 %700  ;;  %v1329_v19 = vld [vmem:[%s2496_s3 + $0x88] sm:$0xff] }
  0xc8   :  { %703 = vst.msk [vmem:[#allocation5 + $0x18] sm:$0xc] %vm198_vm9, %v701_v20  ;;  %v1312_v20 = vld [vmem:[%s2496_s3] sm:$0xff] }
  0xca   :  { %v925_v21 = vpop.permute.xlu1 %924 }
  0xcb   :  { %927 = vst.msk [vmem:[#allocation5 + $0x18] sm:$0xc0] %vm426_vm11, %v925_v21  ;;  %v850_v22 = vpop.permute.xlu0 %849  ;;  %v1826_v21 = vpack.c.bf16 %v1329_v19, %v1328_v18 }
  0xcc   :  { %852 = vst.msk [vmem:[#allocation5 + $0x10] sm:$0xc0] %vm410_vm2, %v850_v22  ;;  %vm1174_vm2 = vcmask 1043458   ;;  %v1313_v22 = vld [vmem:[%s2496_s3 + $0x8] sm:$0xff] }
  0xcd   :  { %1827 = vmatprep.subr.bf16.mxu1 %v1826_v21 }
  0xce   :  { %v606_v24 = vpop.permute.xlu1 %605 }
  0xcf   :  { %608 = vst.msk [vmem:[#allocation5 + $0x18] sm:$0x3] %vm113_vm4, %v606_v24  ;;  %v541_v26 = vpop.permute.xlu0 %540  ;;  %v1331_v24 = vld [vmem:[%s2496_s3 + $0x98] sm:$0xff] }
  0xd0   :  { %543 = vst.msk [vmem:[#allocation5 + $0x10] sm:$0x3] %vm99_vm3, %v541_v26  ;;  %v1828_v26 = vpack.c.bf16 %v1313_v22, %v1312_v20 }
  0xd2   :  { %v715_v29 = vpop.permute.xlu1 %714  ;;  %1829 = vmatpush3.bf16.msra.mxu1 %v1828_v26  ;;  %v1438_v26 = vld [vmem:[%s2498_s5 + $0x8] sm:$0xff] }
  0xd3   :  { %717 = vst.msk [vmem:[#allocation5 + $0x18] sm:$0xc] %vm213_vm10, %v715_v29  ;;  %v647_v30 = vpop.permute.xlu0 %646  ;;  %v1314_v29 = vld [vmem:[%s2496_s3 + $0x10] sm:$0xff] }
  0xd4   :  { %729 = vst.msk [vmem:[#allocation5 + $0x18] sm:$0xc] %vm228_vm14, %v727_v28  ;;  %v1830_v28 = vpack.c.bf16 %v1331_v24, %v1330_v23  ;;  %v1437_v24 = vld [vmem:[%s2498_s5] sm:$0xff] }
  0xd5   :  { %649 = vst.msk [vmem:[#allocation5 + $0x10] sm:$0xc] %vm198_vm9, %v647_v30  ;;  %vm1171_vm9 = vcmask 123904   ;;  %v1315_v30 = vld [vmem:[%s2496_s3 + $0x18] sm:$0xff] }
  0xd6   :  { %v821_v57 = vpop.permute.xlu1 %820  ;;  %1831 = vmatprep.subr.bf16.mxu1 %v1830_v28  ;;  %v1439_v28 = vld [vmem:[%s2498_s5 + $0x10] sm:$0xff] }
  0xd7   :  { %823 = vst.msk [vmem:[#allocation5 + $0x18] sm:$0x30] %vm329_vm7, %v821_v57  ;;  %v753_v31 = vpop.permute.xlu0 %752 }
  0xd8   :  { %755 = vst.msk [vmem:[#allocation5 + $0x10] sm:$0x30] %vm314_vm5, %v753_v31  ;;  %vm1176_vm5 = vcmask 1045508   ;;  %v1832_v31 = vpack.c.bf16 %v1315_v30, %v1314_v29  ;;  %v1951_v29 = vmov 0.0|0.0   ;;  %v1859_v30 = vpack.c.bf16 %v1438_v26, %v1437_v24 }
  0xd9   :  { %1864 = vmatprep.subr.bf16.mxu0 %v1951_v29 }
  0xda   :  { %v940_v32 = vpop.permute.xlu1 %939  ;;  %1833 = vmatpush3.bf16.msra.mxu1 %v1832_v31 }
  0xdb   :  { %942 = vst.msk [vmem:[#allocation5 + $0x18] sm:$0xc0] %vm442_vm12, %v940_v32  ;;  %v865_v33 = vpop.permute.xlu0 %864 }
  0xdc   :  { %867 = vst.msk [vmem:[#allocation5 + $0x10] sm:$0xc0] %vm426_vm11, %v865_v33  ;;  %vm1193_vm11 = vcmask 911104  }
  0xde   :  { %v619_v35 = vpop.permute.xlu1 %618 }
  0xdf   :  { %621 = vst.msk [vmem:[#allocation5 + $0x18] sm:$0x3] %vm127_vm13, %v619_v35  ;;  %v554_v37 = vpop.permute.xlu0 %553 }
  0xe0   :  { %556 = vst.msk [vmem:[#allocation5 + $0x10] sm:$0x3] %vm113_vm4, %v554_v37  ;;  %v1332_v37 = vld [vmem:[%s2496_s3 + $0xa0] sm:$0xff] }
  0xe2   :  { %v767_v38 = vpop.permute.xlu1 %766 }
  0xe3   :  { %769 = vst.msk [vmem:[#allocation5 + $0x10] sm:$0x30] %vm329_vm7, %v767_v38  ;;  %v661_v39 = vpop.permute.xlu0 %660  ;;  %vm1178_vm7 = vcmask 130054  }
  0xe4   :  { %663 = vst.msk [vmem:[#allocation5 + $0x10] sm:$0xc] %vm213_vm10, %v661_v39  ;;  %vm1223_vm10 = vcmask 517504  }
  0xe5   :  { %675 = vst.msk [vmem:[#allocation5 + $0x10] sm:$0xc] %vm228_vm14, %v673_v25  ;;  %vm1237_vm14 = vcmask 648704   ;;  %v1333_v25 = vld [vmem:[%s2496_s3 + $0xa8] sm:$0xff] }
  0xe6   :  { %v880_v41 = vpop.permute.xlu1 %879  ;;  %v1834_v39 = vpack.c.bf16 %v1333_v25, %v1332_v37 }
  0xe7   :  { %882 = vst.msk [vmem:[#allocation5 + $0x10] sm:$0xc0] %vm442_vm12, %v880_v41  ;;  %v835_v42 = vpop.permute.xlu0 %834  ;;  %vm1207_vm12 = vcmask 1042304   ;;  %v1316_v41 = vld [vmem:[%s2496_s3 + $0x20] sm:$0xff] }
  0xe8   :  { %837 = vst.msk [vmem:[#allocation5 + $0x18] sm:$0x30] %vm342_vm8, %v835_v42  ;;  %v1317_v42 = vld [vmem:[%s2496_s3 + $0x28] sm:$0xff]  ;;  %1835 = vmatprep.subr.bf16.mxu1 %v1834_v39 }
  0xea   :  { %v567_v43 = vpop.permute.xlu1 %566 }
  0xeb   :  { %569 = vst.msk [vmem:[#allocation5 + $0x10] sm:$0x3] %vm127_vm13, %v567_v43  ;;  %v955_v52 = vpop.permute.xlu0 %954 }
  0xec   :  { %957 = vst.msk [vmem:[#allocation5 + $0x18] sm:$0xc0] %vm458_vm15, %v955_v52  ;;  %v1836_v52 = vpack.c.bf16 %v1317_v42, %v1316_v41 }
  0xee   :  { %v895_v16 = vpop.permute.xlu1 %894  ;;  %1837 = vmatpush3.bf16.msra.mxu1 %v1836_v52 }
  0xef   :  { %897 = vst.msk [vmem:[#allocation5 + $0x10] sm:$0xc0] %vm458_vm15, %v895_v16  ;;  %v781_v44 = vpop.permute.xlu0 %780  ;;  %vm1267_vm15 = vcmask 255104   ;;  %v1334_v16 = vld [vmem:[%s2496_s3 + $0xb0] sm:$0xff] }
  0xf0   :  { %783 = vst.msk [vmem:[#allocation5 + $0x10] sm:$0x30] %vm342_vm8, %v781_v44  ;;  %v1335_v44 = vld [vmem:[%s2496_s3 + $0xb8] sm:$0xff] }
  0xf2   :  { %v968_v45 = vpop.permute.xlu1 %967 }
  0xf3   :  { %v1009_v46 = vpop.permute.xlu0 %1008  ;;  %970 = vst.msk [vmem:[#allocation5 + $0x20] sm:$0x3] %vm85_vm1, %v968_v45  ;;  %v1043_v47 = vld [vmem:[#allocation5 + $0x18] sm:$0xff]  ;;  %v1838_v45 = vpack.c.bf16 %v1335_v44, %v1334_v16  ;;  %v1682_v44 = vld [vmem:[%s2499_s6] ss:$0 sm:$0xff]  ;;  %s1953_s6 = smov [#allocation9]  }
  0xf4   :  { %1011 = vst.msk [vmem:[#allocation5 + $0x28] sm:$0x3] %vm85_vm1, %v1009_v46  ;;  %1154 = vmatprep.mubr.f32.mxu0 %v1043_v47  ;;  %v1318_v46 = vld [vmem:[%s2496_s3 + $0x30] sm:$0xff]  ;;  %v1319_v47 = vld [vmem:[%s2496_s3 + $0x38] sm:$0xff]  ;;  %s1628_s10 = sshll.u32 %s1953_s6, 4  ;;  %s1629_s10 = int_to_ptr.vmem [resolvable:$true] %s1628_s10 }
  0xf5   :  { %1839 = vmatprep.subr.bf16.mxu1 %v1838_v45  ;;  %p1923_p1 = scmp.lt.s32.totalorder %s1629_s10, %s1629_s10 }
  0xf6   :  { %v981_v49 = vpop.permute.xlu1 %980 }
  0xf7   :  { %v1022_v27 = vpop.permute.xlu0 %1021  ;;  %983 = vst.msk [vmem:[#allocation5 + $0x20] sm:$0x3] %vm99_vm3, %v981_v49  ;;  %v1042_v50 = vld [vmem:[#allocation5 + $0x10] sm:$0xff] }
  0xf8   :  { %1024 = vst.msk [vmem:[#allocation5 + $0x28] sm:$0x3] %vm99_vm3, %v1022_v27  ;;  %1155 = vmatmul.mubr.f32.gmra.mrb[2].mxu0 %v1042_v50  ;;  %vm1175_vm3 = vmor %vm1174_vm2, %vm1173_vm0  ;;  %vm1251_vm0 = vcmask 779904   ;;  %v1840_v27 = vpack.c.bf16 %v1319_v47, %v1318_v46  ;;  %v1336_v50 = vld [vmem:[%s2496_s3 + $0xc0] sm:$0xff]  ;;  %vm1281_vm2 = vcmask 386304  }
  0xf9   :  { %vm1177_vm6 = vmor %vm1176_vm5, %vm1175_vm3  ;;  %vm1291_vm3 = vcmask 916480   ;;  %vm1294_vm5 = vcmask 1041920  }
  0xfa   :  { %v994_v48 = vpop.permute.xlu1 %993  ;;  %vm1179_vm8 = vmor %vm1178_vm7, %vm1177_vm6  ;;  %1841 = vmatpush3.bf16.msra.mxu1 %v1840_v27  ;;  %vm1307_vm6 = vcmask 654336   ;;  %vm1952_vm7 = vmmov 0   ;;  %v1684_v27 = vld [vmem:[%s2501_s8] ss:$0 sm:$0xff]  ;;  %s1918_s8 = scalar_lea.vmem %s1629_s10, 32 }
  0xfb   :  { %v1035_v54 = vpop.permute.xlu0 %1034  ;;  %996 = vst.msk [vmem:[#allocation5 + $0x20] sm:$0x3] %vm113_vm4, %v994_v48  ;;  %p1919_p0 = scmp.ne.s32.totalorder %s1629_s10, %s1918_s8  ;;  %p1924_p2 = scmp.lt.s32.totalorder %s1918_s8, %s1918_s8 }
  0xfc   :  { %1037 = vst.msk [vmem:[#allocation5 + $0x28] sm:$0x3] %vm113_vm4, %v1035_v54  ;;  %vm1168_vm4 = vcmask 130048   ;;  %v1321_v54 = vld [vmem:[%s2496_s3 + $0x48] sm:$0xff] }
  0xfd   :  { %998 = vst.msk [vmem:[#allocation5 + $0x20] sm:$0x3] %vm127_vm13, %v997_v51  ;;  %1039 = vst.msk [vmem:[#allocation5 + $0x28] sm:$0x3] %vm127_vm13, %v1038_v53  ;;  %vm1284_vm13 = vcmask 517120   ;;  %v1337_v51 = vld [vmem:[%s2496_s3 + $0xc8] sm:$0xff]  ;;  %p1925_p3 = por %p1924_p2, %p1923_p1 }
  0xfe   :  { %1180 = vst.msk [vmem:[#allocation3] sm:$0xff] %vm1179_vm8, %v1950_v58  ;;  %v1320_v53 = vld [vmem:[%s2496_s3 + $0x40] sm:$0xff]  ;;  %v1842_v48 = vpack.c.bf16 %v1337_v51, %v1336_v50  ;;  %vm1448_vm8 = vcmask 261120  }
  0xff   :  { %p1926_p4 = pnand %p1925_p3, %p1919_p0 }
 0x100   :  { %1843 = vmatprep.subr.bf16.mxu1 %v1842_v48 }
 0x104   :  { %v1044_v55 = vld [vmem:[#allocation5 + $0x20] sm:$0x3]  ;;  %v1045_v56 = vld [vmem:[#allocation5 + $0x28] sm:$0x3] }
 0x105   :  { %1159 = vmatprep.mubr.f32.mxu0 %v1045_v56  ;;  %v1338_v56 = vld [vmem:[%s2496_s3 + $0xd0] sm:$0xff] }
 0x106   :  { %1160 = vmatmul.mubr.f32.gmra.mrb[4].mxu0 %v1044_v55  ;;  %v1844_v55 = vpack.c.bf16 %v1321_v54, %v1320_v53 }
 0x107   :  { %1791 = vmatprep.mubr.msk.f32.mxu0 %vm1952_vm7, %v1950_v58 }
 0x108   :  { %1845 = vmatpush3.bf16.msra.mxu1 %v1844_v55 }
 0x193   :  { %v1718_v59 = vpop.f32.mrb[0].mxu0 }
 0x194   :  { %v1719_v61 = vpop.f32.mrb[1].mxu0 }
 0x195   :  { %v1720_v62 = vadd.f32 %v1719_v61, %v1718_v59  ;;  %v1339_v59 = vld [vmem:[%s2496_s3 + $0xd8] sm:$0xff]  ;;  %v1322_v61 = vld [vmem:[%s2496_s3 + $0x50] sm:$0xff] }
 0x197   :  { %v1152_v63 = vadd.f32 %v1720_v62, %v1672_v60  ;;  %v1323_v62 = vld [vmem:[%s2496_s3 + $0x58] sm:$0xff] }
 0x199   :  { %v1165_v0 = vmax.f32 %v1152_v63, 0.0 }
 0x19b   :  { %1169 = vst.msk [vmem:[#allocation7] sm:$0xff] %vm1168_vm4, %v1165_v0  ;;  %v1848_v0 = vpack.c.bf16 %v1323_v62, %v1322_v61 }
 0x1a2   :  { %v1675_v36 = vld.sshfl [vmem:[#allocation7 + $0x6] sm:$0x3 pattern:$0x76325410]  ;;  %v1209_v1 = vld [vmem:[#allocation7 + $0x4] sm:$0x3] }
 0x1a3   :  { %1220 = vrot.lane.b32.xlu0 %v1675_v36, %s1948_s25  ;;  %v1673_v2 = vld.sshfl [vmem:[#allocation7] sm:$0x3 pattern:$0x76325410]  ;;  %1210 = vst.msk [vmem:[#allocation3 + $0x2] sm:$0x3] %vm1171_vm9, %v1209_v1 }
 0x1a4   :  { %1190 = vrot.lane.b32.xlu1 %v1673_v2, %s1943_s0  ;;  %v1674_v3 = vld.sshfl [vmem:[#allocation7 + $0x2] sm:$0x3 pattern:$0x76325410]  ;;  %v1340_v36 = vld [vmem:[%s2496_s3 + $0xe0] sm:$0xff]  ;;  %v1341_v2 = vld [vmem:[%s2496_s3 + $0xe8] sm:$0xff] }
 0x1a7   :  { %1204 = vrot.lane.b32.xlu0 %v1674_v3, %s1945_s12  ;;  %v1324_v3 = vld [vmem:[%s2496_s3 + $0x60] sm:$0xff] }
 0x1cb   :  { %v1721_v4 = vpop.f32.mrb[2].mxu0 }
 0x1cc   :  { %v1722_v5 = vpop.f32.mrb[3].mxu0 }
 0x1cd   :  { %v1723_v6 = vadd.f32 %v1722_v5, %v1721_v4  ;;  %v1325_v4 = vld [vmem:[%s2496_s3 + $0x68] sm:$0xff]  ;;  %v1850_v5 = vpack.c.bf16 %v1341_v2, %v1340_v36 }
 0x1cf   :  { %v1157_v7 = vadd.f32 %v1723_v6, %v1672_v60  ;;  %v1852_v6 = vpack.c.bf16 %v1325_v4, %v1324_v3 }
 0x1d1   :  { %v1166_v8 = vmax.f32 %v1157_v7, 0.0  ;;  %v1342_v7 = vld [vmem:[%s2496_s3 + $0xf0] sm:$0xff] }
 0x1d3   :  { %1170 = vst.msk [vmem:[#allocation7 + $0x8] sm:$0xff] %vm1168_vm4, %v1166_v8  ;;  %v1343_v8 = vld [vmem:[%s2496_s3 + $0xf8] sm:$0xff]  ;;  %vm1607_vm4 = vcmask 41984  }
 0x1d9   :  { %v1724_v9 = vpop.f32.mrb[4].mxu0 }
 0x1da   :  { %v1725_v10 = vpop.f32.mrb[5].mxu0  ;;  %v1676_v11 = vld.sshfl [vmem:[#allocation7 + $0x8] sm:$0x3 pattern:$0x76325410] }
 0x1db   :  { %v1726_v12 = vadd.f32 %v1725_v10, %v1724_v9  ;;  %1234 = vrot.lane.b32.xlu0 %v1676_v11, %s1944_s11  ;;  %v1678_v13 = vld.sshfl [vmem:[#allocation7 + $0xe] sm:$0x3 pattern:$0x76325410]  ;;  %v1253_v40 = vld [vmem:[#allocation7 + $0xc] sm:$0x3]  ;;  %v1854_v9 = vpack.c.bf16 %v1343_v8, %v1342_v7 }
 0x1dc   :  { %1264 = vrot.lane.b32.xlu1 %v1678_v13, %s1949_s17  ;;  %1254 = vst.msk [vmem:[#allocation3 + $0x4] sm:$0x3] %vm1171_vm9, %v1253_v40  ;;  %v1677_v17 = vld.sshfl [vmem:[#allocation7 + $0xa] sm:$0x3 pattern:$0x76325410] }
 0x1dd   :  { %v1162_v14 = vadd.f32 %v1726_v12, %v1672_v60  ;;  %v1846_v60 = vpack.c.bf16 %v1339_v59, %v1338_v56  ;;  %v1326_v10 = vld [vmem:[%s2496_s3 + $0x70] sm:$0xff]  ;;  %v1327_v11 = vld [vmem:[%s2496_s3 + $0x78] sm:$0xff] }
 0x1de   :  { %v1856_v13 = vpack.c.bf16 %v1327_v11, %v1326_v10 }
 0x1df   :  { %v1167_v15 = vmax.f32 %v1162_v14, 0.0  ;;  %1847 = vmatprep.subr.bf16.mxu1 %v1846_v60 }
 0x1e0   :  { %1248 = vrot.lane.b32.xlu1 %v1677_v17, %s1947_s22  ;;  %1849 = vmatpush3.bf16.msra.mxu1 %v1848_v0 }
 0x1e1   :  { %1172 = vst.msk [vmem:[#allocation7 + $0x10] sm:$0x3] %vm1171_vm9, %v1167_v15  ;;  %1851 = vmatprep.subr.bf16.mxu1 %v1850_v5 }
 0x1e4   :  { %1853 = vmatpush3.bf16.msra.mxu1 %v1852_v6 }
 0x1e5   :  { %1855 = vmatprep.subr.bf16.mxu1 %v1854_v9 }
 0x1e8   :  { %v1679_v57 = vld.sshfl [vmem:[#allocation7 + $0x10] sm:$0x3 pattern:$0x76325410]  ;;  %1857 = vmatpush3.bf16.msra.mxu1 %v1856_v13 }
 0x1e9   :  { %1278 = vrot.lane.b32.xlu0 %v1679_v57, %s1946_s21  ;;  %1858 = vmatprep.subr.bf16.mxu1 %v1951_v29  ;;  %v1440_v57 = vld [vmem:[%s2498_s5 + $0x18] sm:$0xff] }
 0x1ea   :  { %v1862_v31 = vpack.c.bf16 %v1440_v57, %v1439_v28 }
 0x215   :  { %v1221_v32 = vpop.permute.xlu0 %1220 }
 0x216   :  { %1224 = vst.msk [vmem:[#allocation3 + $0x2] sm:$0x3] %vm1223_vm10, %v1221_v32  ;;  %v1191_v33 = vpop.permute.xlu1 %1190  ;;  %v1523_v32 = vld [vmem:[%s2500_s7] sm:$0xff] }
 0x217   :  { %1194 = vst.msk [vmem:[#allocation3] sm:$0x3] %vm1193_vm11, %v1191_v33  ;;  %v1524_v33 = vld [vmem:[%s2500_s7 + $0x8] sm:$0xff] }
 0x219   :  { %v1205_v34 = vpop.permute.xlu0 %1204 }
 0x21a   :  { %1208 = vst.msk [vmem:[#allocation3] sm:$0x3] %vm1207_vm12, %v1205_v34  ;;  %v1525_v34 = vld [vmem:[%s2500_s7 + $0x10] sm:$0xff] }
 0x221   :  { %v1283_v35 = vld [vmem:[#allocation3] sm:$0x3] }
 0x222   :  { %1285 = vst.msk [vmem:[#allocation6] sm:$0x3] %vm1284_vm13, %v1283_v35  ;;  %v1865_v35 = vpack.c.bf16 %v1524_v33, %v1523_v32 }
 0x224   :  { %1866 = vmatpush3.bf16.msra.mxu0 %v1865_v35 }
 0x225   :  { %1867 = vmatprep.subr.bf16.mxu0 %v1951_v29 }
 0x24d   :  { %v1235_v38 = vpop.permute.xlu0 %1234 }
 0x24e   :  { %1238 = vst.msk [vmem:[#allocation3 + $0x2] sm:$0x3] %vm1237_vm14, %v1235_v38  ;;  %v1265_v43 = vpop.permute.xlu1 %1264  ;;  %v1680_v38 = vld [vmem:[%s2497_s4] ss:$0 sm:$0xff] }
 0x24f   :  { %1268 = vst.msk [vmem:[#allocation3 + $0x4] sm:$0x3] %vm1267_vm15, %v1265_v43 }
 0x252   :  { %v1249_v49 = vpop.permute.xlu1 %1248 }
 0x253   :  { %1252 = vst.msk [vmem:[#allocation3 + $0x2] sm:$0x3] %vm1251_vm0, %v1249_v49 }
 0x25a   :  { %v1286_v63 = vld [vmem:[#allocation3] sm:$0xf] }
 0x25b   :  { %1288 = vrot.lane.b32.xlu1 %v1286_v63, %s1945_s12  ;;  %v1279_v1 = vpop.permute.xlu0 %1278  ;;  %v1296_v12 = vld [vmem:[#allocation3 + $0x2] sm:$0x3] }
 0x25c   :  { %1282 = vst.msk [vmem:[#allocation3 + $0x4] sm:$0x3] %vm1281_vm2, %v1279_v1 }
 0x25f   :  { %1298 = vrot.lane.b32.xlu1 %v1296_v12, %s1943_s0 }
 0x263   :  { %v1302_v40 = vld [vmem:[#allocation3 + $0x2] sm:$0xf] }
 0x264   :  { %1304 = vrot.lane.b32.xlu0 %v1302_v40, %s1947_s22 }
 0x2cd   :  { %v1289_v14 = vpop.permute.xlu1 %1288 }
 0x2ce   :  { %v1290_v15 = vrot.slane %v1289_v14, 2 }
 0x2d0   :  { %v1292_v17 = vsel %vm1291_vm3, %v1289_v14, %v1290_v15 }
 0x2d1   :  { %1295 = vst.msk [vmem:[#allocation6] sm:$0x3] %vm1294_vm5, %v1292_v17  ;;  %v1299_v18 = vpop.permute.xlu1 %1298 }
 0x2d2   :  { %1301 = vst.msk [vmem:[#allocation6 + $0x2] sm:$0x3] %vm1284_vm13, %v1299_v18 }
 0x2d6   :  { %v1305_v19 = vpop.permute.xlu0 %1304 }
 0x2d7   :  { %v1306_v20 = vrot.slane %v1305_v19, 2 }
 0x2d9   :  { %v1308_v21 = vsel %vm1307_vm6, %v1305_v19, %v1306_v20 }
 0x2da   :  { %1310 = vst.msk [vmem:[#allocation6 + $0x2] sm:$0x3] %vm1294_vm5, %v1308_v21 }
 0x2e1   :  { %v1681_v22 = vld.sshfl [vmem:[#allocation6] sm:$0x33 pattern:$0x76325410] }
 0x2e2   :  { %v1359_v23 = vcombine.high %v1681_v22, %v1681_v22 }
 0x2e4   :  { %1426 = vmatprep.mubr.f32.mxu1 %v1359_v23 }
 0x2e5   :  { %1427 = vmatmul.mubr.f32.vlgmr.msra.gmra.mrb[0].mxu1 %v1681_v22 }
 0x2e6   :  { %1780 = vmatprep.mubr.msk.f32.mxu1 %vm1952_vm7, %v1950_v58  ;;  %1860 = vmatpush3.bf16.msra.mxu1 %v1859_v30  ;;  %v1526_v58 = vld [vmem:[%s2500_s7 + $0x18] sm:$0xff] }
 0x2e7   :  { %1861 = vmatprep.subr.bf16.mxu1 %v1951_v29  ;;  %v1868_v37 = vpack.c.bf16 %v1526_v58, %v1525_v34 }
 0x2e9   :  { %1869 = vmatpush3.bf16.msra.mxu0 %v1868_v37 }
 0x2ea   :  { %1863 = vmatpush3.bf16.msra.mxu1 %v1862_v31 }
 0x3b8   :  { %v1759_v25 = vpop.f32.mrb[0].mxu1 }
 0x3b9   :  { %v1760_v39 = vpop.f32.mrb[1].mxu1 }
 0x3ba   :  { %v1761_v41 = vadd.f32 %v1760_v39, %v1759_v25 }
 0x3bc   :  { %v1429_v42 = vadd.f32 %v1761_v41, %v1680_v38 }
 0x3be   :  { %v1432_v43 = vmax.f32 %v1429_v42, 0.0 }
 0x3c0   :  { %1433 = vst.msk [vmem:[#allocation8] sm:$0x3] %vm85_vm1, %v1432_v43 }
 0x3c7   :  { %v1434_v52 = vld [vmem:[#allocation8] sm:$0x3] }
 0x3c8   :  { %1435 = vst.msk [vmem:[#allocation4] sm:$0x3] %vm85_vm1, %v1434_v52  ;;  %vm1620_vm1 = vcmask 50224  }
 0x3cf   :  { %v1436_v16 = vld [vmem:[#allocation4] sm:$0x3] }
 0x3d0   :  { %1781 = vmatmul.mubr.msk.f32.vlgmr.msra.gmra.mrb[2].mxu1 %vm1448_vm8, %v1436_v16 }
 0x4a3   :  { %v1518_v45 = vpop.f32.mrb[2].mxu1 }
 0x4a4   :  { %v1519_v46 = vadd.f32 %v1682_v44, %v1518_v45  ;;  %v1782_v47 = vpop.f32.mrb[3].mxu1 }
 0x4a6   :  { %v1522_v49 = vmax.f32 %v1519_v46, 0.0 }
 0x4a8   :  { %1792 = vmatmul.mubr.msk.f32.vlgmr.msra.gmra.mrb[6].mxu0 %vm1448_vm8, %v1522_v49 }
 0x57b   :  { %v1603_v50 = vpop.f32.mrb[6].mxu0 }
 0x57c   :  { %v1604_v51 = vadd.f32 %v1684_v27, %v1603_v50  ;;  %v1793_v53 = vpop.f32.mrb[7].mxu0 }
 0x57e   :  { %v1608_v48 = vsel %vm1607_vm4, %v1604_v51, -inf }
 0x57f   :  { %1609 = vmax.xlane.f32.xlu0 %v1608_v48 }
 0x60c   :  { %v1610_v54 = vpop.xlane.xlu0 %1609 }
 0x60d   :  { %v1611_v55 = vsub.f32 %v1604_v51, %v1610_v54 }
 0x60f   :  { %v1612_v56 = vmul.f32 1.442695, %v1611_v55 }
 0x611   :  { %1914 = vpow2.f32 %v1612_v56 }
 0x61b   :  { %v1915_v59 = vpop.eup %1914 }
 0x61c   :  { %v1614_v60 = vsel %vm1607_vm4, %v1915_v59, 0.0 }
 0x61d   :  { %1615 = vadd.xlane.f32.xlu1 %v1614_v60 }
 0x6aa   :  { %v1616_v61 = vpop.xlane.xlu1 %1615 }
 0x6ab   :  { %1916 = vrcp.f32 %v1616_v61 }
 0x6b5   :  { %v1917_v62 = vpop.eup %1916 }
 0x6b6   :  { %v1618_v63 = vmul.f32 %v1917_v62, %v1915_v59 }
 0x6b8   :  { %1619 = vst.msk [vmem:[#allocation9] sm:$0x3] %vm1607_vm4, %v1618_v63 }
 0x6b9   :  { %1621 = vst.msk [vmem:[#allocation9] sm:$0x3] %vm1620_vm1, %v1604_v51 }
 0x6ba   :  { %1929 = shalt.err (!%p1926_p4)
}
 0x6bb   :  { %s1930_s21 = scalar_lea.hbm %s2502_s9, 32 }
 0x6bc   :  { %p1931_p5 = scmp.ne.s32.totalorder %s2502_s9, %s1930_s21  ;;  %p1934_p6 = scmp.lt.u32.totalorder %s1930_s21, %s2502_s9 }
 0x6be   :  { %p1936_p7 = pnand %p1934_p6, %p1931_p5 }
 0x6c0   :  { %1939 = shalt.err (!%p1936_p7)
}
 0x6c1   :  { %1631 = dma.vmem_to_hbm [thread:$0]  %s1629_s10, 32, %s2502_s9, [#allocation10]  }
 0x6c2   :  { %1940 = dma.done.wait [#allocation10], 32  }
 0x6c3   :  { %1941 = vsyncadd [#allocation10], 4294967264 }
 0x6c4   :  { %1635 = vsyncpa [#allocation10], 1 }

</bundles_post_ra>
